<compile_context>
chip_gen: v6e
topology: v6e:2x2x1
jax: 0.10.0
libtpu: 0.0.40
codegen_flags: <defaults>
</compile_context>

<pallas_src>
import functools

import jax
import jax.numpy as jnp
from jax.experimental import pallas as pl
from jax.experimental.pallas import tpu as pltpu


def mlp_kernel(x_ref,
               w1_ref, b1_ref,
               w2_ref, b2_ref,
               w3_ref, b3_ref,
               w4_ref, b4_ref,
               out_ref,
               h3_ref):
    """Fused 4-layer MLP on one VMEM-resident batch tile.

    Grid is (batch_tiles, out_col_tiles). Layers 1-3 depend only on the batch
    tile, so they run once per batch tile (j == 0) and the bf16 activation is
    cached in VMEM scratch; every j step then multiplies against the (1024, tn)
    slice of w4 and writes its (bm, tn) output block.
    """
    cdt = w1_ref.dtype  # MXU compute dtype (bfloat16); accumulation stays f32.

    @pl.when(pl.program_id(1) == 0)
    def _():
        x = x_ref[...]
        h = jnp.maximum(
            jnp.dot(x, w1_ref[...], preferred_element_type=jnp.float32) + b1_ref[...], 0.0)
        h = jnp.maximum(
            jnp.dot(h.astype(cdt), w2_ref[...], preferred_element_type=jnp.float32) + b2_ref[...], 0.0)
        h = jnp.maximum(
            jnp.dot(h.astype(cdt), w3_ref[...], preferred_element_type=jnp.float32) + b3_ref[...], 0.0)
        h3_ref[...] = h.astype(h3_ref.dtype)

    out = jnp.dot(h3_ref[...], w4_ref[...], preferred_element_type=jnp.float32) + b4_ref[...]
    out_ref[...] = out.astype(out_ref.dtype)


# --------------------------------------------------------------------------- #
# Tiling heuristics (trace-time Python; all static).
# --------------------------------------------------------------------------- #
def _round_up(x, m):
    return ((x + m - 1) // m) * m


def _chip_kind():
    try:
        return jax.devices()[0].device_kind.lower()
    except Exception:  # pragma: no cover - defensive; default to v6e-like tiling
        return ""


def _pick_bm(B, kind):
    """Batch tile: MXU-shape aligned per generation; never over-pad tiny batches."""
    if "v5" in kind:
        mxu_bm = 128                      # v5e: 4x128x128 MXU
    else:
        mxu_bm = 256                      # v6e / v7x: 2x256x256 MXU
        if "v6" in kind and B >= 2048:
            mxu_bm = 512                  # v6e big batch: amortize per-step overhead
    dual_tc = any(t in kind for t in ("v7", "7x", "v4", "v5p"))
    if B >= 2 * mxu_bm:
        return mxu_bm                     # already >= 2 grid steps
    if dual_tc and B >= 256:
        # Guarantee >= 2 'parallel' grid steps so both TensorCores get work.
        return min(mxu_bm, max(128, _round_up((B + 1) // 2, 128)))
    # Tiny batch: round up only to the bf16 sublane pack (16 rows), not a full tile.
    return min(mxu_bm, _round_up(B, 16))


def _pick_tn(last):
    """Last-layer N tile: fully resident while small, 512/256/128-col blocks after."""
    if last <= 1024:
        return last
    for tn in (512, 256, 128):
        if last % tn == 0:
            return tn
    # TODO(synk): odd H*W stays fully resident (masked vst); pad H*W to 128 if it matters.
    return last


# --------------------------------------------------------------------------- #
# Parameters
# --------------------------------------------------------------------------- #
def init_params(key, input_size, output_shape, dtype=jnp.float32):
    """Deterministic init mimicking nn.Linear; weights stored (in, out) for x @ W."""
    last = output_shape[0] * output_shape[1]
    dims = [(input_size, 256), (256, 512), (512, 1024), (1024, last)]
    params = []
    for fan_in, fan_out in dims:
        key, kw, kb = jax.random.split(key, 3)
        bound = 1.0 / jnp.sqrt(fan_in)
        w = jax.random.uniform(kw, (fan_in, fan_out), dtype, -bound, bound)
        b = jax.random.uniform(kb, (1, fan_out), dtype, -bound, bound)
        params.append((w, b))
    return params


def prepare_params(params, compute_dtype=jnp.bfloat16):
    """One-time cast of weights to the MXU compute dtype; biases stay float32."""
    return [(w.astype(compute_dtype), b.astype(jnp.float32)) for (w, b) in params]


# --------------------------------------------------------------------------- #
# Forward pass
# --------------------------------------------------------------------------- #
@functools.partial(jax.jit, static_argnames=("output_shape",))
def pytorch_nn_model_forward(x, params, output_shape):
    """Forward matching PyTorchNNModel.forward: (B, input_size) -> (B, 1, H, W)."""
    B, input_size = x.shape
    H, W = output_shape
    last = H * W
    (w1, b1), (w2, b2), (w3, b3), (w4, b4) = params
    compute_dtype = w1.dtype
    out_dtype = jnp.float32

    kind = _chip_kind()
    bm = _pick_bm(B, kind)
    tn = _pick_tn(last)
    b_padded = _round_up(B, bm)
    n_bsteps = b_padded // bm
    n_nsteps = (last + tn - 1) // tn
    is_v7x = ("v7" in kind) or ("7x" in kind)
    vmem_limit = (48 if is_v7x else 64) * 1024 * 1024

    x = x.astype(compute_dtype)
    if b_padded != B:
        x = jnp.pad(x, ((0, b_padded - B), (0, 0)))

    # Grid-invariant blocks: constant index_map + single buffering (no re-DMA,
    # no wasted second VMEM buffer).
    def invariant(arr):
        return pl.BlockSpec(arr.shape, lambda i, j: (0, 0),
                            pipeline_mode=pl.Buffered(1))

    if n_nsteps == 1:
        w4_spec, b4_spec = invariant(w4), invariant(b4)
    else:
        w4_spec = pl.BlockSpec((w4.shape[0], tn), lambda i, j: (0, j))
        b4_spec = pl.BlockSpec((1, tn), lambda i, j: (0, j))

    flops = 2 * b_padded * (input_size * 256 + 256 * 512 + 512 * 1024 + 1024 * last)
    bytes_accessed = int(
        x.size * x.dtype.itemsize
        + sum(int(w.size * w.dtype.itemsize + b.size * b.dtype.itemsize)
              for (w, b) in params)
        + b_padded * last * 4)

    out_flat = pl.pallas_call(
        mlp_kernel,
        out_shape=jax.ShapeDtypeStruct((b_padded, last), out_dtype),
        grid_spec=pltpu.PrefetchScalarGridSpec(
            num_scalar_prefetch=0,
            grid=(n_bsteps, n_nsteps),
            in_specs=[
                pl.BlockSpec((bm, input_size), lambda i, j: (i, 0)),
                invariant(w1), invariant(b1),
                invariant(w2), invariant(b2),
                invariant(w3), invariant(b3),
                w4_spec, b4_spec,
            ],
            out_specs=pl.BlockSpec((bm, tn), lambda i, j: (i, j)),
            scratch_shapes=[pltpu.VMEM((bm, 1024), compute_dtype)],
        ),
        compiler_params=pltpu.CompilerParams(
            dimension_semantics=("parallel", "arbitrary"),
            vmem_limit_bytes=vmem_limit,
        ),
        cost_estimate=pl.CostEstimate(
            flops=flops, transcendentals=0, bytes_accessed=bytes_accessed),
    )(x, w1, b1, w2, b2, w3, b3, w4, b4)

    # Drop batch padding; matches: output.view(x.size(0), 1, H, W)
    return out_flat[:B].reshape(B, 1, H, W)


def reference_forward(x, params, output_shape):
    """Pure-JAX reference using the same bf16-weight / f32-accumulate math."""
    (w1, b1), (w2, b2), (w3, b3), (w4, b4) = params
    cdt = w1.dtype
    h = x.astype(cdt)
    h = jnp.maximum(jnp.dot(h, w1, preferred_element_type=jnp.float32) + b1, 0.0)
    h = jnp.maximum(jnp.dot(h.astype(cdt), w2, preferred_element_type=jnp.float32) + b2, 0.0)
    h = jnp.maximum(jnp.dot(h.astype(cdt), w3, preferred_element_type=jnp.float32) + b3, 0.0)
    h = jnp.dot(h.astype(cdt), w4, preferred_element_type=jnp.float32) + b4
    return h.reshape(x.shape[0], 1, output_shape[0], output_shape[1])


if __name__ == "__main__":
    key = jax.random.PRNGKey(0)
    input_size = 32

    # --- Test 1: module's natural small config (B=8, output 16x16). ---
    output_shape = (16, 16)
    batch = 8
    kx, kp = jax.random.split(key)
    x = jax.random.normal(kx, (batch, input_size), jnp.float32)
    params = prepare_params(init_params(kp, input_size, output_shape))

    out = jax.block_until_ready(pytorch_nn_model_forward(x, params, output_shape))
    ref = reference_forward(x, params, output_shape)
    assert out.shape == (batch, 1, output_shape[0], output_shape[1]), out.shape
    assert jnp.allclose(out, ref, atol=1e-2, rtol=1e-2), "mismatch vs reference (test 1)"

    # --- Test 2: exercises batch padding (B=40 -> bm=48) and last-layer N tiling
    #     (48*32 = 1536 -> three 512-column blocks reusing the cached h3). ---
    output_shape2 = (48, 32)
    batch2 = 40
    kx2, kp2 = jax.random.split(kp)
    x2 = jax.random.normal(kx2, (batch2, input_size), jnp.float32)
    params2 = prepare_params(init_params(kp2, input_size, output_shape2))

    out2 = jax.block_until_ready(pytorch_nn_model_forward(x2, params2, output_shape2))
    ref2 = reference_forward(x2, params2, output_shape2)
    assert out2.shape == (batch2, 1, output_shape2[0], output_shape2[1]), out2.shape
    assert jnp.allclose(out2, ref2, atol=1e-2, rtol=1e-2), "mismatch vs reference (test 2)"

    print("KERNEL_OK")
</pallas_src>

<mosaic_0001>
module attributes {stable_mosaic.version = 11 : i64} {
  func.func @mlp_kernel(%arg0: i32, %arg1: i32, %arg2: memref<16x32xbf16, #tpu.memory_space<vmem>>, %arg3: memref<32x256xbf16, #tpu.memory_space<vmem>>, %arg4: memref<1x256xf32, #tpu.memory_space<vmem>>, %arg5: memref<256x512xbf16, #tpu.memory_space<vmem>>, %arg6: memref<1x512xf32, #tpu.memory_space<vmem>>, %arg7: memref<512x1024xbf16, #tpu.memory_space<vmem>>, %arg8: memref<1x1024xf32, #tpu.memory_space<vmem>>, %arg9: memref<1024x256xbf16, #tpu.memory_space<vmem>>, %arg10: memref<1x256xf32, #tpu.memory_space<vmem>>, %arg11: memref<16x256xf32, #tpu.memory_space<vmem>>, %arg12: memref<16x1024xbf16, #tpu.memory_space<vmem>>) attributes {dimension_semantics = [#tpu.dimension_semantics<parallel>, #tpu.dimension_semantics<arbitrary>], iteration_bounds = array<i64: 1, 1>, scalar_prefetch = 0 : i64, scratch_operands = 1 : i64, tpu.core_type = #tpu.core_type<tc>, window_params = [{transform_indices = @transform_0, window_bounds = array<i64: 16, 32>}, {pipeline_mode = #tpu.pipeline_mode<synchronous>, transform_indices = @transform_1, window_bounds = array<i64: 32, 256>}, {pipeline_mode = #tpu.pipeline_mode<synchronous>, transform_indices = @transform_2, window_bounds = array<i64: 1, 256>}, {pipeline_mode = #tpu.pipeline_mode<synchronous>, transform_indices = @transform_3, window_bounds = array<i64: 256, 512>}, {pipeline_mode = #tpu.pipeline_mode<synchronous>, transform_indices = @transform_4, window_bounds = array<i64: 1, 512>}, {pipeline_mode = #tpu.pipeline_mode<synchronous>, transform_indices = @transform_5, window_bounds = array<i64: 512, 1024>}, {pipeline_mode = #tpu.pipeline_mode<synchronous>, transform_indices = @transform_6, window_bounds = array<i64: 1, 1024>}, {pipeline_mode = #tpu.pipeline_mode<synchronous>, transform_indices = @transform_7, window_bounds = array<i64: 1024, 256>}, {pipeline_mode = #tpu.pipeline_mode<synchronous>, transform_indices = @transform_8, window_bounds = array<i64: 1, 256>}, {transform_indices = @transform_9, window_bounds = array<i64: 16, 256>}]} {
    %c0_i32 = arith.constant 0 : i32
    %0 = arith.cmpi eq, %arg1, %c0_i32 : i32
    %1 = arith.extui %0 : i1 to i32
    %c0_i32_0 = arith.constant 0 : i32
    %2 = arith.cmpi ne, %1, %c0_i32_0 : i32
    scf.if %2 {
      %c0_8 = arith.constant 0 : index
      %c0_9 = arith.constant 0 : index
      %10 = vector.load %arg2[%c0_8, %c0_9] : memref<16x32xbf16, #tpu.memory_space<vmem>>, vector<16x32xbf16>
      %c0_10 = arith.constant 0 : index
      %c0_11 = arith.constant 0 : index
      %11 = vector.load %arg3[%c0_10, %c0_11] : memref<32x256xbf16, #tpu.memory_space<vmem>>, vector<32x256xbf16>
      %cst_12 = arith.constant dense<0.000000e+00> : vector<16x256xf32>
      %12 = tpu.matmul %10, %11, %cst_12 {dimension_numbers = #tpu.dot_dimension_numbers<[1], [0], [0], [1], [0, 0, 1, 1], [], []>} : vector<16x32xbf16>, vector<32x256xbf16>, vector<16x256xf32> -> vector<16x256xf32>
      %c0_13 = arith.constant 0 : index
      %c0_14 = arith.constant 0 : index
      %13 = vector.load %arg4[%c0_13, %c0_14] : memref<1x256xf32, #tpu.memory_space<vmem>>, vector<1x256xf32>
      %14 = vector.broadcast %13 : vector<1x256xf32> to vector<16x256xf32>
      %15 = arith.addf %12, %14 : vector<16x256xf32>
      %cst_15 = arith.constant 0.000000e+00 : f32
      %16 = vector.broadcast %cst_15 : f32 to vector<16x256xf32>
      %17 = arith.maximumf %15, %16 : vector<16x256xf32>
      %18 = arith.truncf %17 : vector<16x256xf32> to vector<16x256xbf16>
      %c0_16 = arith.constant 0 : index
      %c0_17 = arith.constant 0 : index
      %19 = vector.load %arg5[%c0_16, %c0_17] : memref<256x512xbf16, #tpu.memory_space<vmem>>, vector<256x512xbf16>
      %cst_18 = arith.constant dense<0.000000e+00> : vector<16x512xf32>
      %20 = tpu.matmul %18, %19, %cst_18 {dimension_numbers = #tpu.dot_dimension_numbers<[1], [0], [0], [1], [0, 0, 1, 1], [], []>} : vector<16x256xbf16>, vector<256x512xbf16>, vector<16x512xf32> -> vector<16x512xf32>
      %c0_19 = arith.constant 0 : index
      %c0_20 = arith.constant 0 : index
      %21 = vector.load %arg6[%c0_19, %c0_20] : memref<1x512xf32, #tpu.memory_space<vmem>>, vector<1x512xf32>
      %22 = vector.broadcast %21 : vector<1x512xf32> to vector<16x512xf32>
      %23 = arith.addf %20, %22 : vector<16x512xf32>
      %cst_21 = arith.constant 0.000000e+00 : f32
      %24 = vector.broadcast %cst_21 : f32 to vector<16x512xf32>
      %25 = arith.maximumf %23, %24 : vector<16x512xf32>
      %26 = arith.truncf %25 : vector<16x512xf32> to vector<16x512xbf16>
      %c0_22 = arith.constant 0 : index
      %c0_23 = arith.constant 0 : index
      %27 = vector.load %arg7[%c0_22, %c0_23] : memref<512x1024xbf16, #tpu.memory_space<vmem>>, vector<512x1024xbf16>
      %cst_24 = arith.constant dense<0.000000e+00> : vector<16x1024xf32>
      %28 = tpu.matmul %26, %27, %cst_24 {dimension_numbers = #tpu.dot_dimension_numbers<[1], [0], [0], [1], [0, 0, 1, 1], [], []>} : vector<16x512xbf16>, vector<512x1024xbf16>, vector<16x1024xf32> -> vector<16x1024xf32>
      %c0_25 = arith.constant 0 : index
      %c0_26 = arith.constant 0 : index
      %29 = vector.load %arg8[%c0_25, %c0_26] : memref<1x1024xf32, #tpu.memory_space<vmem>>, vector<1x1024xf32>
      %30 = vector.broadcast %29 : vector<1x1024xf32> to vector<16x1024xf32>
      %31 = arith.addf %28, %30 : vector<16x1024xf32>
      %cst_27 = arith.constant 0.000000e+00 : f32
      %32 = vector.broadcast %cst_27 : f32 to vector<16x1024xf32>
      %33 = arith.maximumf %31, %32 : vector<16x1024xf32>
      %34 = arith.truncf %33 : vector<16x1024xf32> to vector<16x1024xbf16>
      %c0_28 = arith.constant 0 : index
      %c0_29 = arith.constant 0 : index
      %35 = vector.load %arg12[%c0_28, %c0_29] : memref<16x1024xbf16, #tpu.memory_space<vmem>>, vector<16x1024xbf16>
      tpu.vector_store %arg12[%c0_28, %c0_29], %34 {strides = array<i32>} : memref<16x1024xbf16, #tpu.memory_space<vmem>>, vector<16x1024xbf16>,
    } else {
    }
    %c0 = arith.constant 0 : index
    %c0_1 = arith.constant 0 : index
    %3 = vector.load %arg12[%c0, %c0_1] : memref<16x1024xbf16, #tpu.memory_space<vmem>>, vector<16x1024xbf16>
    %c0_2 = arith.constant 0 : index
    %c0_3 = arith.constant 0 : index
    %4 = vector.load %arg9[%c0_2, %c0_3] : memref<1024x256xbf16, #tpu.memory_space<vmem>>, vector<1024x256xbf16>
    %cst = arith.constant dense<0.000000e+00> : vector<16x256xf32>
    %5 = tpu.matmul %3, %4, %cst {dimension_numbers = #tpu.dot_dimension_numbers<[1], [0], [0], [1], [0, 0, 1, 1], [], []>} : vector<16x1024xbf16>, vector<1024x256xbf16>, vector<16x256xf32> -> vector<16x256xf32>
    %c0_4 = arith.constant 0 : index
    %c0_5 = arith.constant 0 : index
    %6 = vector.load %arg10[%c0_4, %c0_5] : memref<1x256xf32, #tpu.memory_space<vmem>>, vector<1x256xf32>
    %7 = vector.broadcast %6 : vector<1x256xf32> to vector<16x256xf32>
    %8 = arith.addf %5, %7 : vector<16x256xf32>
    %c0_6 = arith.constant 0 : index
    %c0_7 = arith.constant 0 : index
    %9 = vector.load %arg11[%c0_6, %c0_7] : memref<16x256xf32, #tpu.memory_space<vmem>>, vector<16x256xf32>
    tpu.vector_store %arg11[%c0_6, %c0_7], %8 {strides = array<i32>} : memref<16x256xf32, #tpu.memory_space<vmem>>, vector<16x256xf32>,
    return
  }
  func.func @transform_0(%arg0: i32, %arg1: i32) -> (i32, i32) {
    %c0_i32 = arith.constant 0 : i32
    %c0_i32_0 = arith.constant 0 : i32
    return %arg0, %c0_i32 : i32, i32
  }
  func.func @transform_1(%arg0: i32, %arg1: i32) -> (i32, i32) {
    %c0_i32 = arith.constant 0 : i32
    %c0_i32_0 = arith.constant 0 : i32
    %c0_i32_1 = arith.constant 0 : i32
    return %c0_i32, %c0_i32_0 : i32, i32
  }
  func.func @transform_2(%arg0: i32, %arg1: i32) -> (i32, i32) {
    %c0_i32 = arith.constant 0 : i32
    %c0_i32_0 = arith.constant 0 : i32
    %c0_i32_1 = arith.constant 0 : i32
    return %c0_i32, %c0_i32_0 : i32, i32
  }
  func.func @transform_3(%arg0: i32, %arg1: i32) -> (i32, i32) {
    %c0_i32 = arith.constant 0 : i32
    %c0_i32_0 = arith.constant 0 : i32
    %c0_i32_1 = arith.constant 0 : i32
    return %c0_i32, %c0_i32_0 : i32, i32
  }
  func.func @transform_4(%arg0: i32, %arg1: i32) -> (i32, i32) {
    %c0_i32 = arith.constant 0 : i32
    %c0_i32_0 = arith.constant 0 : i32
    %c0_i32_1 = arith.constant 0 : i32
    return %c0_i32, %c0_i32_0 : i32, i32
  }
  func.func @transform_5(%arg0: i32, %arg1: i32) -> (i32, i32) {
    %c0_i32 = arith.constant 0 : i32
    %c0_i32_0 = arith.constant 0 : i32
    %c0_i32_1 = arith.constant 0 : i32
    return %c0_i32, %c0_i32_0 : i32, i32
  }
  func.func @transform_6(%arg0: i32, %arg1: i32) -> (i32, i32) {
    %c0_i32 = arith.constant 0 : i32
    %c0_i32_0 = arith.constant 0 : i32
    %c0_i32_1 = arith.constant 0 : i32
    return %c0_i32, %c0_i32_0 : i32, i32
  }
  func.func @transform_7(%arg0: i32, %arg1: i32) -> (i32, i32) {
    %c0_i32 = arith.constant 0 : i32
    %c0_i32_0 = arith.constant 0 : i32
    %c0_i32_1 = arith.constant 0 : i32
    return %c0_i32, %c0_i32_0 : i32, i32
  }
  func.func @transform_8(%arg0: i32, %arg1: i32) -> (i32, i32) {
    %c0_i32 = arith.constant 0 : i32
    %c0_i32_0 = arith.constant 0 : i32
    %c0_i32_1 = arith.constant 0 : i32
    return %c0_i32, %c0_i32_0 : i32, i32
  }
  func.func @transform_9(%arg0: i32, %arg1: i32) -> (i32, i32) {
    %c0_i32 = arith.constant 0 : i32
    return %arg0, %arg1 : i32, i32
  }
}

</mosaic_0001>

<bundles_post_ra>
// kernel: pytorch_nn_model_forward.1
= control target key start
LH: loop header
LB: loop body
LE: loop exit
PB: predicated region body
PF: predicated region fallthrough
CT: control target
= control target key end

     0   :  { %14 = vsyncpa [#allocation4], 0  ;;  %s4751_s0 = inlined_call_operand.vmem [shape: bf16[16,32], index: 0, kind: input, shape index: {}]   ;;  %s4752_s1 = inlined_call_operand.hbm [shape: bf16[32,256], index: 1, kind: input, shape index: {}]   ;;  %s4753_s2 = inlined_call_operand.vmem [shape: f32[1,256], index: 2, kind: input, shape index: {}]   ;;  %s4754_s3 = inlined_call_operand.hbm [shape: bf16[256,512], index: 3, kind: input, shape index: {}]   ;;  %s4755_s4 = inlined_call_operand.vmem [shape: f32[1,512], index: 4, kind: input, shape index: {}]   ;;  %s4756_s5 = inlined_call_operand.hbm [shape: bf16[512,1024], index: 5, kind: input, shape index: {}]   ;;  %s4757_s6 = inlined_call_operand.vmem [shape: f32[1,1024], index: 6, kind: input, shape index: {}]   ;;  %s4758_s7 = inlined_call_operand.hbm [shape: bf16[1024,256], index: 7, kind: input, shape index: {}]   ;;  %s4759_s8 = inlined_call_operand.vmem [shape: f32[1,256], index: 8, kind: input, shape index: {}]   ;;  %s4760_s9 = inlined_call_operand.vmem [shape: f32[16,256], index: 9, kind: output, shape index: {}]  }
   0x1   :  { %15 = vsyncpa [#allocation6], 0 }
   0x2   :  { %16 = vsyncpa [#allocation9], 0  ;;  %s4575_s30 = smov [#allocation5]  }
   0x3   :  { %s38_s10 = sshll.u32 %s4575_s30, 4  ;;  %s39_s10 = int_to_ptr.vmem [resolvable:$true] %s38_s10 }
   0x4   :  { %s4497_s11 = scalar_lea.vmem %s39_s10, 8192  ;;  %p4502_p1 = scmp.lt.s32.totalorder %s39_s10, %s39_s10 }
   0x5   :  { %p4498_p0 = scmp.ne.s32.totalorder %s39_s10, %s4497_s11  ;;  %p4503_p2 = scmp.lt.s32.totalorder %s4497_s11, %s4497_s11 }
   0x7   :  { %p4504_p3 = por %p4503_p2, %p4502_p1 }
   0x9   :  { %p4505_p4 = pnand %p4504_p3, %p4498_p0 }
   0xb   :  { %4508 = shalt.err (!%p4505_p4)
}
   0xc   :  { %s4576_s12 = smov 256   ;;  %s4577_s13 = smov 16  }
   0xd   :  { %44 = dma.hbm_to_vmem [thread:$0]  %s4754_s3, 8192, %s39_s10, [#allocation6], %s4576_s12, %s4576_s12, %s4577_s13  }
   0xe   :  { %s4578_s16 = smov [#allocation3]  }
   0xf   :  { %s24_s17 = sshll.u32 %s4578_s16, 4  ;;  %s25_s17 = int_to_ptr.vmem [resolvable:$true] %s24_s17 }
  0x10   :  { %s4517_s18 = scalar_lea.vmem %s25_s17, 512  ;;  %p4522_p6 = scmp.lt.s32.totalorder %s25_s17, %s25_s17 }
  0x11   :  { %p4518_p5 = scmp.ne.s32.totalorder %s25_s17, %s4517_s18  ;;  %p4523_p7 = scmp.lt.s32.totalorder %s4517_s18, %s4517_s18 }
  0x13   :  { %p4524_p8 = por %p4523_p7, %p4522_p6 }
  0x15   :  { %p4525_p9 = pnand %p4524_p8, %p4518_p5 }
  0x17   :  { %4528 = shalt.err (!%p4525_p9)
}
  0x18   :  { %s4579_s19 = smov 128   ;;  %s4580_s20 = smov 8  }
  0x19   :  { %30 = dma.hbm_to_vmem [thread:$0]  %s4752_s1, 512, %s25_s17, [#allocation4], %s4579_s19, %s4579_s19, %s4580_s20  }
  0x1a   :  { %s4581_s23 = smov [#allocation7]  }
  0x1b   :  { %s52_s24 = sshll.u32 %s4581_s23, 4  ;;  %s53_s24 = int_to_ptr.vmem [resolvable:$true] %s52_s24 }
  0x1c   :  { %s4537_s3 = scalar_lea.vmem %s53_s24, 32768  ;;  %p4542_p11 = scmp.lt.s32.totalorder %s53_s24, %s53_s24 }
  0x1d   :  { %p4538_p10 = scmp.ne.s32.totalorder %s53_s24, %s4537_s3  ;;  %p4543_p12 = scmp.lt.s32.totalorder %s4537_s3, %s4537_s3 }
  0x1f   :  { %p4544_p13 = por %p4543_p12, %p4542_p11 }
  0x21   :  { %p4545_p0 = pnand %p4544_p13, %p4538_p10 }
  0x23   :  { %4548 = shalt.err (!%p4545_p0)
}
  0x24   :  { %s4582_s25 = smov 512   ;;  %s4583_s26 = smov 32  }
  0x25   :  { %58 = dma.hbm_to_vmem [thread:$0]  %s4756_s5, 32768, %s53_s24, [#allocation6], %s4582_s25, %s4582_s25, %s4583_s26  }
  0x26   :  { %s4584_s29 = smov [#allocation8]  }
  0x27   :  { %s66_s30 = sshll.u32 %s4584_s29, 4  ;;  %s67_s30 = int_to_ptr.vmem [resolvable:$true] %s66_s30 }
  0x28   :  { %s4557_s1 = scalar_lea.vmem %s67_s30, 16384  ;;  %p4562_p2 = scmp.lt.s32.totalorder %s67_s30, %s67_s30 }
  0x29   :  { %p4558_p1 = scmp.ne.s32.totalorder %s67_s30, %s4557_s1  ;;  %p4563_p3 = scmp.lt.s32.totalorder %s4557_s1, %s4557_s1 }
  0x2b   :  { %p4564_p4 = por %p4563_p3, %p4562_p2 }
  0x2d   :  { %p4565_p5 = pnand %p4564_p4, %p4558_p1 }
  0x2f   :  { %4568 = shalt.err (!%p4565_p5)
}
  0x30   :  { %72 = dma.hbm_to_vmem [thread:$0]  %s4758_s7, 16384, %s67_s30, [#allocation9], %s4579_s19, %s4579_s19, %s4580_s20  }
  0x31   :  { %4569 = dma.done.wait [#allocation4], 512  }
  0x32   :  { %4570 = vsyncadd [#allocation4], 4294966784 }
  0x33   :  { %4571 = dma.done.wait [#allocation6], 40960  }
  0x34   :  { %4572 = vsyncadd [#allocation6], 4294926336 }
  0x35   :  { %4573 = dma.done.wait [#allocation9], 16384  }
  0x36   :  { %4574 = vsyncadd [#allocation9], 4294950912  ;;  %v4585_v0 = vmov 0   ;;  %v4194_v1 = vld [vmem:[#allocation3 + $0x14] ss:$8 sps:$4 sm:$0xff]   ;;  %v4200_v5 = vld [vmem:[%s4751_s0] sm:$0xff]  }
  0x37   :  { %171 = vmatprep.mubr.bf16.mxu0 %v4585_v0  ;;  %v4196_v2 = vld [vmem:[#allocation3 + $0x10] ss:$8 sps:$4 sm:$0xff]   ;;  %151 = vmatprep.subr.bf16.mxu0 %v4194_v1  ;;  %v4197_v3 = vld [vmem:[#allocation3 + $0x4] ss:$8 sps:$4 sm:$0xff]   ;;  %v4199_v4 = vld [vmem:[#allocation3] ss:$8 sps:$4 sm:$0xff]  }
  0x38   :  { %152 = vmatpush1.bf16.msra.mxu0 %v4196_v2  ;;  %v4201_v6 = vld [vmem:[#allocation5 + $0xe4] ss:$16 sps:$4 sm:$0xff]   ;;  %v4203_v7 = vld [vmem:[#allocation5 + $0xe8] ss:$16 sps:$4 sm:$0xff]   ;;  %v4205_v8 = vld [vmem:[#allocation5 + $0xec] ss:$16 sps:$4 sm:$0xff]  }
  0x39   :  { %153 = vmatprep.subr.bf16.mxu0 %v4197_v3  ;;  %594 = vmatprep.subr.bf16.mxu1 %v4201_v6  ;;  %v4206_v9 = vld [vmem:[#allocation5 + $0xe0] ss:$16 sps:$4 sm:$0xff]   ;;  %vm135_vm0 = vcmask 261120   ;;  %v4207_v10 = vld [vmem:[#allocation5 + $0xc4] ss:$16 sps:$4 sm:$0xff]  }
  0x3a   :  { %595 = vmatpush1.bf16.msra.mxu1 %v4206_v9  ;;  %v4211_v11 = vld [vmem:[#allocation5 + $0xcc] ss:$16 sps:$4 sm:$0xff]   ;;  %v4212_v12 = vld [vmem:[#allocation5 + $0xc0] ss:$16 sps:$4 sm:$0xff]   ;;  %v4213_v13 = vld [vmem:[#allocation5 + $0xa4] ss:$16 sps:$4 sm:$0xff]  }
  0x3b   :  { %596 = vmatprep.subr.bf16.mxu1 %v4207_v10  ;;  %v4209_v14 = vld [vmem:[#allocation5 + $0xc8] ss:$16 sps:$4 sm:$0xff]   ;;  %v4217_v15 = vld [vmem:[#allocation5 + $0xac] ss:$16 sps:$4 sm:$0xff]   ;;  %v4218_v16 = vld [vmem:[#allocation5 + $0xa0] ss:$16 sps:$4 sm:$0xff]  }
  0x3c   :  { %154 = vmatpush1.bf16.msra.mxu0 %v4199_v4  ;;  %v4219_v17 = vld [vmem:[#allocation5 + $0x84] ss:$16 sps:$4 sm:$0xff]   ;;  %v4215_v18 = vld [vmem:[#allocation5 + $0xa8] ss:$16 sps:$4 sm:$0xff]   ;;  %v4223_v19 = vld [vmem:[#allocation5 + $0x8c] ss:$16 sps:$4 sm:$0xff]  }
  0x3d   :  { %637 = vmatprep.subr.bf16.mxu0 %v4205_v8  ;;  %v4224_v20 = vld [vmem:[#allocation5 + $0x80] ss:$16 sps:$4 sm:$0xff]   ;;  %v4225_v21 = vld [vmem:[#allocation5 + $0x64] ss:$16 sps:$4 sm:$0xff]   ;;  %v4221_v22 = vld [vmem:[#allocation5 + $0x88] ss:$16 sps:$4 sm:$0xff]  }
  0x3e   :  { %597 = vmatpush1.bf16.msra.mxu1 %v4212_v12  ;;  %v4229_v23 = vld [vmem:[#allocation5 + $0x6c] ss:$16 sps:$4 sm:$0xff]   ;;  %v4230_v24 = vld [vmem:[#allocation5 + $0x60] ss:$16 sps:$4 sm:$0xff]   ;;  %v4231_v25 = vld [vmem:[#allocation5 + $0x44] ss:$16 sps:$4 sm:$0xff]  }
  0x3f   :  { %3702 = vmatmul.mubr.msk.bf16.vlgmr.msra.gmra.mxu0 %vm135_vm0, %v4200_v5  ;;  %598 = vmatprep.subr.bf16.mxu1 %v4213_v13  ;;  %v4227_v26 = vld [vmem:[#allocation5 + $0x68] ss:$16 sps:$4 sm:$0xff]   ;;  %v4235_v27 = vld [vmem:[#allocation5 + $0x4c] ss:$16 sps:$4 sm:$0xff]   ;;  %v4236_v28 = vld [vmem:[#allocation5 + $0x40] ss:$16 sps:$4 sm:$0xff]  }
  0x40   :  { %638 = vmatpush1.bf16.msra.mxu0 %v4203_v7  ;;  %v4237_v29 = vld [vmem:[#allocation5 + $0x24] ss:$16 sps:$4 sm:$0xff]   ;;  %v4233_v30 = vld [vmem:[#allocation5 + $0x48] ss:$16 sps:$4 sm:$0xff]   ;;  %v4241_v31 = vld [vmem:[#allocation5 + $0x2c] ss:$16 sps:$4 sm:$0xff]  }
  0x41   :  { %639 = vmatprep.subr.bf16.mxu0 %v4211_v11  ;;  %v4242_v32 = vld [vmem:[#allocation5 + $0x20] ss:$16 sps:$4 sm:$0xff]   ;;  %v4243_v33 = vld [vmem:[#allocation5 + $0x4] ss:$16 sps:$4 sm:$0xff]   ;;  %v4239_v34 = vld [vmem:[#allocation5 + $0x28] ss:$16 sps:$4 sm:$0xff]  }
  0x42   :  { %599 = vmatpush1.bf16.msra.mxu1 %v4218_v16  ;;  %v4247_v35 = vld [vmem:[#allocation5 + $0xc] ss:$16 sps:$4 sm:$0xff]   ;;  %v4248_v36 = vld [vmem:[#allocation5] ss:$16 sps:$4 sm:$0xff]   ;;  %v4249_v37 = vld [vmem:[#allocation5 + $0x1e4] ss:$16 sps:$4 sm:$0xff]  }
  0x43   :  { %600 = vmatprep.subr.bf16.mxu1 %v4219_v17  ;;  %v4245_v38 = vld [vmem:[#allocation5 + $0x8] ss:$16 sps:$4 sm:$0xff]   ;;  %v4253_v39 = vld [vmem:[#allocation5 + $0x1ec] ss:$16 sps:$4 sm:$0xff]   ;;  %v4254_v40 = vld [vmem:[#allocation5 + $0x1e0] ss:$16 sps:$4 sm:$0xff]  }
  0x44   :  { %640 = vmatpush1.bf16.msra.mxu0 %v4209_v14  ;;  %v4251_v41 = vld [vmem:[#allocation5 + $0x1e8] ss:$16 sps:$4 sm:$0xff]   ;;  %v4255_v42 = vld [vmem:[#allocation5 + $0x1c4] ss:$16 sps:$4 sm:$0xff]   ;;  %v4259_v43 = vld [vmem:[#allocation5 + $0x1cc] ss:$16 sps:$4 sm:$0xff]   ;;  %v100_v14 = vlaneseq }
  0x45   :  { %641 = vmatprep.subr.bf16.mxu0 %v4217_v15  ;;  %v4260_v44 = vld [vmem:[#allocation5 + $0x1c0] ss:$16 sps:$4 sm:$0xff]   ;;  %v4261_v45 = vld [vmem:[#allocation5 + $0x1a4] ss:$16 sps:$4 sm:$0xff]   ;;  %v4257_v46 = vld [vmem:[#allocation5 + $0x1c8] ss:$16 sps:$4 sm:$0xff]  }
  0x46   :  { %601 = vmatpush1.bf16.msra.mxu1 %v4224_v20  ;;  %v4265_v47 = vld [vmem:[#allocation5 + $0x1ac] ss:$16 sps:$4 sm:$0xff]   ;;  %v4266_v48 = vld [vmem:[#allocation5 + $0x1a0] ss:$16 sps:$4 sm:$0xff]   ;;  %v4267_v49 = vld [vmem:[#allocation5 + $0x184] ss:$16 sps:$4 sm:$0xff]  }
  0x47   :  { %602 = vmatprep.subr.bf16.mxu1 %v4225_v21  ;;  %v4263_v50 = vld [vmem:[#allocation5 + $0x1a8] ss:$16 sps:$4 sm:$0xff]   ;;  %v4271_v51 = vld [vmem:[#allocation5 + $0x18c] ss:$16 sps:$4 sm:$0xff]   ;;  %v4272_v52 = vld [vmem:[#allocation5 + $0x180] ss:$16 sps:$4 sm:$0xff]  }
  0x48   :  { %642 = vmatpush1.bf16.msra.mxu0 %v4215_v18  ;;  %v4273_v53 = vld [vmem:[#allocation5 + $0x164] ss:$16 sps:$4 sm:$0xff]   ;;  %v4269_v54 = vld [vmem:[#allocation5 + $0x188] ss:$16 sps:$4 sm:$0xff]   ;;  %v4277_v55 = vld [vmem:[#allocation5 + $0x16c] ss:$16 sps:$4 sm:$0xff]  }
  0x49   :  { %643 = vmatprep.subr.bf16.mxu0 %v4223_v19  ;;  %v4278_v56 = vld [vmem:[#allocation5 + $0x160] ss:$16 sps:$4 sm:$0xff]   ;;  %v4275_v57 = vld [vmem:[#allocation5 + $0x168] ss:$16 sps:$4 sm:$0xff]   ;;  %v4279_v58 = vld [vmem:[#allocation5 + $0x144] ss:$16 sps:$4 sm:$0xff]  }
  0x4a   :  { %603 = vmatpush1.bf16.msra.mxu1 %v4230_v24  ;;  %v4283_v59 = vld [vmem:[#allocation5 + $0x14c] ss:$16 sps:$4 sm:$0xff]   ;;  %v4281_v60 = vld [vmem:[#allocation5 + $0x148] ss:$16 sps:$4 sm:$0xff]   ;;  %v4284_v61 = vld [vmem:[#allocation5 + $0x140] ss:$16 sps:$4 sm:$0xff]  }
  0x4b   :  { %604 = vmatprep.subr.bf16.mxu1 %v4231_v25  ;;  %v4285_v62 = vld [vmem:[#allocation5 + $0x124] ss:$16 sps:$4 sm:$0xff]   ;;  %v4289_v63 = vld [vmem:[#allocation5 + $0x12c] ss:$16 sps:$4 sm:$0xff]   ;;  %v4287_v0 = vld [vmem:[#allocation5 + $0x128] ss:$16 sps:$4 sm:$0xff]  }
  0x4c   :  { %644 = vmatpush1.bf16.msra.mxu0 %v4221_v22  ;;  %v4290_v1 = vld [vmem:[#allocation5 + $0x120] ss:$16 sps:$4 sm:$0xff]   ;;  %v4291_v2 = vld [vmem:[#allocation5 + $0x104] ss:$16 sps:$4 sm:$0xff]   ;;  %v4295_v3 = vld [vmem:[#allocation5 + $0x10c] ss:$16 sps:$4 sm:$0xff]  }
  0x4d   :  { %645 = vmatprep.subr.bf16.mxu0 %v4229_v23  ;;  %v4293_v4 = vld [vmem:[#allocation5 + $0x108] ss:$16 sps:$4 sm:$0xff]   ;;  %v4296_v5 = vld [vmem:[#allocation5 + $0x100] ss:$16 sps:$4 sm:$0xff]   ;;  %v4651_v15 = vshrl.u32 %v100_v14, 7 }
  0x4e   :  { %605 = vmatpush1.bf16.msra.mxu1 %v4236_v28  ;;  %v748_v6 = vld [vmem:[#allocation7 + $0x1c0] sm:$0xff] }
  0x4f   :  { %606 = vmatprep.subr.bf16.mxu1 %v4237_v29  ;;  %v752_v7 = vld [vmem:[#allocation7 + $0x1e0] sm:$0xff]  ;;  %v4654_v16 = vsub.s32 1, %v4651_v15  ;;  %v4657_v17 = vsub.s32 0, %v4651_v15 }
  0x50   :  { %646 = vmatpush1.bf16.msra.mxu0 %v4227_v26  ;;  %v876_v8 = vld [vmem:[#allocation7 + $0x5c0] sm:$0xff]  ;;  %v3823_v9 = vcombine.low %v748_v6, %v752_v7  ;;  %v3824_v10 = vcombine.high %v748_v6, %v752_v7 }
  0x51   :  { %647 = vmatprep.subr.bf16.mxu0 %v4235_v27  ;;  %v880_v11 = vld [vmem:[#allocation7 + $0x5e0] sm:$0xff] }
  0x52   :  { %607 = vmatpush1.bf16.msra.mxu1 %v4242_v32  ;;  %v3951_v12 = vcombine.low %v876_v8, %v880_v11  ;;  %v3952_v13 = vcombine.high %v876_v8, %v880_v11  ;;  %v98_v18 = vld [vmem:[%s4753_s2] sm:$0x3] }
  0x53   :  { %608 = vmatprep.subr.bf16.mxu1 %v4243_v33  ;;  %v107_v20 = vrot.slane %v98_v18, %v4654_v16  ;;  %v103_v21 = vrot.slane %v98_v18, %v4657_v17  ;;  %v744_v33 = vld [vmem:[#allocation7 + $0x1a0] sm:$0xff] }
  0x54   :  { %648 = vmatpush1.bf16.msra.mxu0 %v4233_v30  ;;  %v740_v30 = vld [vmem:[#allocation7 + $0x180] sm:$0xff] }
  0x55   :  { %649 = vmatprep.subr.bf16.mxu0 %v4241_v31  ;;  %v828_v11 = vld [vmem:[#allocation7 + $0x440] sm:$0xff] }
  0x56   :  { %609 = vmatpush1.bf16.msra.mxu1 %v4248_v36 }
  0x57   :  { %610 = vmatprep.subr.bf16.mxu1 %v4249_v37 }
  0x58   :  { %650 = vmatpush1.bf16.msra.mxu0 %v4239_v34  ;;  %v868_v34 = vld [vmem:[#allocation7 + $0x580] sm:$0xff] }
  0x59   :  { %651 = vmatprep.subr.bf16.mxu0 %v4247_v35  ;;  %v872_v35 = vld [vmem:[#allocation7 + $0x5a0] sm:$0xff] }
  0x5a   :  { %611 = vmatpush2.bf16.msra.mxu1 %v4254_v40  ;;  %v3944_v40 = vcombine.high %v868_v34, %v872_v35 }
  0x5b   :  { %612 = vmatprep.subr.bf16.mxu1 %v4255_v42  ;;  %v736_v42 = vld [vmem:[#allocation7 + $0x160] sm:$0xff] }
  0x5c   :  { %652 = vmatpush1.bf16.msra.mxu0 %v4245_v38 }
  0x5d   :  { %653 = vmatprep.subr.bf16.mxu0 %v4253_v39  ;;  %v3816_v39 = vcombine.high %v740_v30, %v744_v33 }
  0x5e   :  { %613 = vmatpush2.bf16.msra.mxu1 %v4260_v44  ;;  %v864_v44 = vld [vmem:[#allocation7 + $0x560] sm:$0xff] }
  0x5f   :  { %614 = vmatprep.subr.bf16.mxu1 %v4261_v45  ;;  %v3815_v45 = vcombine.low %v740_v30, %v744_v33  ;;  %v940_v30 = vld [vmem:[#allocation7 + $0x7c0] sm:$0xff] }
  0x60   :  { %654 = vmatpush2.bf16.msra.mxu0 %v4251_v41  ;;  %v732_v41 = vld [vmem:[#allocation7 + $0x140] sm:$0xff] }
  0x61   :  { %655 = vmatprep.subr.bf16.mxu0 %v4259_v43  ;;  %v860_v43 = vld [vmem:[#allocation7 + $0x540] sm:$0xff] }
  0x62   :  { %615 = vmatpush2.bf16.msra.mxu1 %v4266_v48  ;;  %v3936_v48 = vcombine.high %v860_v43, %v864_v44 }
  0x63   :  { %616 = vmatprep.subr.bf16.mxu1 %v4267_v49  ;;  %v724_v49 = vld [vmem:[#allocation7 + $0x100] sm:$0xff] }
  0x64   :  { %656 = vmatpush2.bf16.msra.mxu0 %v4257_v46  ;;  %v3943_v46 = vcombine.low %v868_v34, %v872_v35 }
  0x65   :  { %657 = vmatprep.subr.bf16.mxu0 %v4265_v47  ;;  %v3808_v47 = vcombine.high %v732_v41, %v736_v42 }
  0x66   :  { %617 = vmatpush2.bf16.msra.mxu1 %v4272_v52  ;;  %v856_v52 = vld [vmem:[#allocation7 + $0x520] sm:$0xff] }
  0x67   :  { %618 = vmatprep.subr.bf16.mxu1 %v4273_v53  ;;  %v3807_v53 = vcombine.low %v732_v41, %v736_v42 }
  0x68   :  { %658 = vmatpush2.bf16.msra.mxu0 %v4263_v50  ;;  %v728_v50 = vld [vmem:[#allocation7 + $0x120] sm:$0xff] }
  0x69   :  { %659 = vmatprep.subr.bf16.mxu0 %v4271_v51  ;;  %v852_v51 = vld [vmem:[#allocation7 + $0x500] sm:$0xff] }
  0x6a   :  { %619 = vmatpush2.bf16.msra.mxu1 %v4278_v56  ;;  %v3928_v56 = vcombine.high %v852_v51, %v856_v52 }
  0x6b   :  { %620 = vmatprep.subr.bf16.mxu1 %v4279_v58  ;;  %v720_v58 = vld [vmem:[#allocation7 + $0xe0] sm:$0xff] }
  0x6c   :  { %660 = vmatpush2.bf16.msra.mxu0 %v4269_v54  ;;  %v3935_v54 = vcombine.low %v860_v43, %v864_v44  ;;  %v796_v44 = vld [vmem:[#allocation7 + $0x340] sm:$0xff] }
  0x6d   :  { %661 = vmatprep.subr.bf16.mxu0 %v4277_v55  ;;  %v3800_v55 = vcombine.high %v724_v49, %v728_v50 }
  0x6e   :  { %621 = vmatpush2.bf16.msra.mxu1 %v4284_v61  ;;  %v3799_v61 = vcombine.low %v724_v49, %v728_v50 }
  0x6f   :  { %622 = vmatprep.subr.bf16.mxu1 %v4285_v62  ;;  %v3927_v62 = vcombine.low %v852_v51, %v856_v52  ;;  %v788_v52 = vld [vmem:[#allocation7 + $0x300] sm:$0xff] }
  0x70   :  { %662 = vmatpush2.bf16.msra.mxu0 %v4275_v57  ;;  %v716_v57 = vld [vmem:[#allocation7 + $0xc0] sm:$0xff] }
  0x71   :  { %663 = vmatprep.subr.bf16.mxu0 %v4283_v59  ;;  %v844_v59 = vld [vmem:[#allocation7 + $0x4c0] sm:$0xff] }
  0x72   :  { %623 = vmatpush2.bf16.msra.mxu1 %v4290_v1  ;;  %v708_v1 = vld [vmem:[#allocation7 + $0x80] sm:$0xff] }
  0x73   :  { %624 = vmatprep.subr.bf16.mxu1 %v4291_v2  ;;  %v712_v2 = vld [vmem:[#allocation7 + $0xa0] sm:$0xff] }
  0x74   :  { %664 = vmatpush2.bf16.msra.mxu0 %v4281_v60  ;;  %v848_v60 = vld [vmem:[#allocation7 + $0x4e0] sm:$0xff]  ;;  %v3784_v7 = vcombine.high %v708_v1, %v712_v2 }
  0x75   :  { %665 = vmatprep.subr.bf16.mxu0 %v4289_v63  ;;  %v3792_v63 = vcombine.high %v716_v57, %v720_v58  ;;  %v3919_v6 = vcombine.low %v844_v59, %v848_v60 }
  0x76   :  { %625 = vmatpush2.bf16.msra.mxu1 %v4296_v5  ;;  %v3791_v5 = vcombine.low %v716_v57, %v720_v58 }
  0x77   :  { %2270 = vmatprep.subr.bf16.mxu1 %v3824_v10  ;;  %v704_v10 = vld [vmem:[#allocation7 + $0x60] sm:$0xff] }
  0x78   :  { %666 = vmatpush2.bf16.msra.mxu0 %v4287_v0  ;;  %v3920_v0 = vcombine.high %v844_v59, %v848_v60  ;;  %v780_v60 = vld [vmem:[#allocation7 + $0x2c0] sm:$0xff] }
  0x79   :  { %667 = vmatprep.subr.bf16.mxu0 %v4295_v3  ;;  %v836_v3 = vld [vmem:[#allocation7 + $0x480] sm:$0xff] }
  0x7c   :  { %668 = vmatpush2.bf16.msra.mxu0 %v4293_v4  ;;  %v840_v4 = vld [vmem:[#allocation7 + $0x4a0] sm:$0xff] }
  0x7d   :  { %2313 = vmatprep.subr.bf16.mxu0 %v3952_v13  ;;  %v3912_v8 = vcombine.high %v836_v3, %v840_v4  ;;  %v3783_v13 = vcombine.low %v708_v1, %v712_v2  ;;  %v3911_v14 = vcombine.low %v836_v3, %v840_v4 }
  0xff   :  { %v173_v19 = vpop.f32.mrf.mxu0 }
 0x100   :  { %v174_v26 = vadd.f32 %v173_v19, %v103_v21 }
 0x101   :  { %v175_v22 = vpop.f32.mrf.mxu0 }
 0x102   :  { %v176_v24 = vadd.f32 %v175_v22, %v107_v20  ;;  %v182_v36 = vmax.f32 %v174_v26, 0.0  ;;  %v820_v22 = vld [vmem:[#allocation7 + $0x400] sm:$0xff] }
 0x103   :  { %v177_v23 = vpop.f32.mrf.mxu0 }
 0x104   :  { %v178_v25 = vadd.f32 %v177_v23, %v103_v21  ;;  %v183_v31 = vmax.f32 %v176_v24, 0.0  ;;  %v696_v21 = vld [vmem:[#allocation7 + $0x20] sm:$0xff] }
 0x105   :  { %v179_v27 = vpop.f32.mrf.mxu0  ;;  %v824_v23 = vld [vmem:[#allocation7 + $0x420] sm:$0xff] }
 0x106   :  { %v180_v28 = vadd.f32 %v179_v27, %v107_v20  ;;  %v184_v29 = vmax.f32 %v178_v25, 0.0  ;;  %v692_v20 = vld [vmem:[#allocation7] sm:$0xff]  ;;  %v3896_v27 = vcombine.high %v820_v22, %v824_v23  ;;  %v3895_v33 = vcombine.low %v820_v22, %v824_v23 }
 0x107   :  { %v3768_v26 = vcombine.high %v692_v20, %v696_v21 }
 0x108   :  { %v185_v32 = vmax.f32 %v180_v28, 0.0  ;;  %v186_v38 = vpack.c.bf16 %v184_v29, %v182_v36  ;;  %v812_v28 = vld [vmem:[#allocation7 + $0x3c0] sm:$0xff] }
 0x109   :  { %v816_v29 = vld [vmem:[#allocation7 + $0x3e0] sm:$0xff] }
 0x10a   :  { %v187_v37 = vpack.c.bf16 %v185_v32, %v183_v31  ;;  %v944_v31 = vld [vmem:[#allocation7 + $0x7e0] sm:$0xff]  ;;  %v3767_v32 = vcombine.low %v692_v20, %v696_v21  ;;  %v3888_v34 = vcombine.high %v812_v28, %v816_v29 }
 0x10b   :  { %v4016_v35 = vcombine.high %v940_v30, %v944_v31  ;;  %v804_v36 = vld [vmem:[#allocation7 + $0x380] sm:$0xff]  ;;  %v4015_v41 = vcombine.low %v940_v30, %v944_v31 }
 0x10c   :  { %626 = vmatprep.mubr.bf16.mxu1 %v187_v37  ;;  %669 = vmatprep.mubr.bf16.mxu0 %v187_v37  ;;  %v808_v37 = vld [vmem:[#allocation7 + $0x3a0] sm:$0xff] }
 0x10d   :  { %627 = vmatmul.mubr.bf16.vlgmr.msra.gmra.mxu1 %v186_v38  ;;  %670 = vmatmul.mubr.bf16.vlgmr.msra.gmra.mxu0 %v186_v38  ;;  %v932_v38 = vld [vmem:[#allocation7 + $0x780] sm:$0xff]  ;;  %v3880_v42 = vcombine.high %v804_v36, %v808_v37 }
 0x10e   :  { %2271 = vmatpush1.bf16.msra.mxu1 %v3823_v9  ;;  %2314 = vmatpush1.bf16.msra.mxu0 %v3951_v12  ;;  %v700_v9 = vld [vmem:[#allocation7 + $0x40] sm:$0xff] }
 0x10f   :  { %2272 = vmatprep.subr.bf16.mxu1 %v3816_v39  ;;  %2315 = vmatprep.subr.bf16.mxu0 %v3944_v40  ;;  %v832_v12 = vld [vmem:[#allocation7 + $0x460] sm:$0xff]  ;;  %v3776_v18 = vcombine.high %v700_v9, %v704_v10  ;;  %v3775_v24 = vcombine.low %v700_v9, %v704_v10  ;;  %v3887_v40 = vcombine.low %v812_v28, %v816_v29 }
 0x110   :  { %v3904_v19 = vcombine.high %v828_v11, %v832_v12  ;;  %v3903_v25 = vcombine.low %v828_v11, %v832_v12  ;;  %v936_v39 = vld [vmem:[#allocation7 + $0x7a0] sm:$0xff] }
 0x111   :  { %v4008_v43 = vcombine.high %v932_v38, %v936_v39  ;;  %v4007_v49 = vcombine.low %v932_v38, %v936_v39  ;;  %v904_v10 = vld [vmem:[#allocation7 + $0x6a0] sm:$0xff] }
 0x112   :  { %2273 = vmatpush1.bf16.msra.mxu1 %v3815_v45  ;;  %2316 = vmatpush1.bf16.msra.mxu0 %v3943_v46  ;;  %v800_v45 = vld [vmem:[#allocation7 + $0x360] sm:$0xff] }
 0x113   :  { %2274 = vmatprep.subr.bf16.mxu1 %v3808_v47  ;;  %2317 = vmatprep.subr.bf16.mxu0 %v3936_v48  ;;  %v924_v46 = vld [vmem:[#allocation7 + $0x740] sm:$0xff]  ;;  %v3879_v48 = vcombine.low %v804_v36, %v808_v37  ;;  %v3872_v50 = vcombine.high %v796_v44, %v800_v45  ;;  %v881_v37 = vld [vmem:[#allocation7 + $0x5e8] sm:$0xff] }
 0x114   :  { %v928_v47 = vld [vmem:[#allocation7 + $0x760] sm:$0xff] }
 0x115   :  { %v4000_v51 = vcombine.high %v924_v46, %v928_v47  ;;  %v3999_v57 = vcombine.low %v924_v46, %v928_v47  ;;  %v896_v21 = vld [vmem:[#allocation7 + $0x660] sm:$0xff] }
 0x116   :  { %2275 = vmatpush1.bf16.msra.mxu1 %v3807_v53  ;;  %2318 = vmatpush1.bf16.msra.mxu0 %v3935_v54  ;;  %v792_v53 = vld [vmem:[#allocation7 + $0x320] sm:$0xff] }
 0x117   :  { %2276 = vmatprep.subr.bf16.mxu1 %v3800_v55  ;;  %2319 = vmatprep.subr.bf16.mxu0 %v3928_v56  ;;  %v916_v54 = vld [vmem:[#allocation7 + $0x700] sm:$0xff]  ;;  %v3871_v56 = vcombine.low %v796_v44, %v800_v45  ;;  %v3864_v58 = vcombine.high %v788_v52, %v792_v53 }
 0x118   :  { %v920_v55 = vld [vmem:[#allocation7 + $0x720] sm:$0xff] }
 0x119   :  { %v3992_v59 = vcombine.high %v916_v54, %v920_v55  ;;  %v3991_v1 = vcombine.low %v916_v54, %v920_v55  ;;  %v888_v29 = vld [vmem:[#allocation7 + $0x620] sm:$0xff] }
 0x11a   :  { %2277 = vmatpush1.bf16.msra.mxu1 %v3799_v61  ;;  %2320 = vmatpush1.bf16.msra.mxu0 %v3927_v62  ;;  %v784_v61 = vld [vmem:[#allocation7 + $0x2e0] sm:$0xff] }
 0x11b   :  { %2278 = vmatprep.subr.bf16.mxu1 %v3792_v63  ;;  %2321 = vmatprep.subr.bf16.mxu0 %v3920_v0  ;;  %v908_v62 = vld [vmem:[#allocation7 + $0x6c0] sm:$0xff]  ;;  %v3863_v0 = vcombine.low %v788_v52, %v792_v53  ;;  %v3856_v2 = vcombine.high %v780_v60, %v784_v61  ;;  %v3855_v4 = vcombine.low %v780_v60, %v784_v61 }
 0x11c   :  { %v912_v63 = vld [vmem:[#allocation7 + $0x6e0] sm:$0xff] }
 0x11d   :  { %v3984_v3 = vcombine.high %v908_v62, %v912_v63 }
 0x11e   :  { %2279 = vmatpush1.bf16.msra.mxu1 %v3791_v5  ;;  %2322 = vmatpush1.bf16.msra.mxu0 %v3919_v6  ;;  %v3983_v5 = vcombine.low %v908_v62, %v912_v63  ;;  %v772_v6 = vld [vmem:[#allocation7 + $0x280] sm:$0xff] }
 0x11f   :  { %2280 = vmatprep.subr.bf16.mxu1 %v3784_v7  ;;  %2323 = vmatprep.subr.bf16.mxu0 %v3912_v8  ;;  %v776_v7 = vld [vmem:[#allocation7 + $0x2a0] sm:$0xff] }
 0x120   :  { %v900_v8 = vld [vmem:[#allocation7 + $0x680] sm:$0xff]  ;;  %v3848_v9 = vcombine.high %v772_v6, %v776_v7  ;;  %v3847_v11 = vcombine.low %v772_v6, %v776_v7  ;;  %v741_v6 = vld [vmem:[#allocation7 + $0x188] sm:$0xff] }
 0x121   :  { %v3975_v12 = vcombine.low %v900_v8, %v904_v10 }
 0x122   :  { %2281 = vmatpush1.bf16.msra.mxu1 %v3783_v13  ;;  %2324 = vmatpush1.bf16.msra.mxu0 %v3911_v14  ;;  %v3976_v13 = vcombine.high %v900_v8, %v904_v10  ;;  %v764_v14 = vld [vmem:[#allocation7 + $0x240] sm:$0xff]  ;;  %v869_v10 = vld [vmem:[#allocation7 + $0x588] sm:$0xff] }
 0x123   :  { %2282 = vmatprep.subr.bf16.mxu1 %v3776_v18  ;;  %2325 = vmatprep.subr.bf16.mxu0 %v3904_v19  ;;  %v768_v18 = vld [vmem:[#allocation7 + $0x260] sm:$0xff] }
 0x124   :  { %v892_v19 = vld [vmem:[#allocation7 + $0x640] sm:$0xff]  ;;  %v3840_v20 = vcombine.high %v764_v14, %v768_v18  ;;  %v3839_v22 = vcombine.low %v764_v14, %v768_v18 }
 0x125   :  { %v3967_v23 = vcombine.low %v892_v19, %v896_v21 }
 0x126   :  { %2283 = vmatpush1.bf16.msra.mxu1 %v3775_v24  ;;  %2326 = vmatpush1.bf16.msra.mxu0 %v3903_v25  ;;  %v3968_v24 = vcombine.high %v892_v19, %v896_v21  ;;  %v756_v25 = vld [vmem:[#allocation7 + $0x200] sm:$0xff]  ;;  %v733_v19 = vld [vmem:[#allocation7 + $0x148] sm:$0xff] }
 0x127   :  { %2284 = vmatprep.subr.bf16.mxu1 %v3768_v26  ;;  %2327 = vmatprep.subr.bf16.mxu0 %v3896_v27  ;;  %v760_v26 = vld [vmem:[#allocation7 + $0x220] sm:$0xff] }
 0x128   :  { %v884_v27 = vld [vmem:[#allocation7 + $0x600] sm:$0xff]  ;;  %v3832_v28 = vcombine.high %v756_v25, %v760_v26  ;;  %v3831_v30 = vcombine.low %v756_v25, %v760_v26 }
 0x129   :  { %v3959_v31 = vcombine.low %v884_v27, %v888_v29 }
 0x12a   :  { %2285 = vmatpush1.bf16.msra.mxu1 %v3767_v32  ;;  %2328 = vmatpush1.bf16.msra.mxu0 %v3895_v33  ;;  %v3960_v32 = vcombine.high %v884_v27, %v888_v29  ;;  %v749_v33 = vld [vmem:[#allocation7 + $0x1c8] sm:$0xff] }
 0x12b   :  { %2286 = vmatprep.subr.bf16.mxu1 %v3888_v34  ;;  %2329 = vmatprep.subr.bf16.mxu0 %v4016_v35  ;;  %v753_v34 = vld [vmem:[#allocation7 + $0x1e8] sm:$0xff] }
 0x12c   :  { %v877_v35 = vld [vmem:[#allocation7 + $0x5c8] sm:$0xff]  ;;  %v3826_v36 = vcombine.high %v749_v33, %v753_v34  ;;  %v3825_v38 = vcombine.low %v749_v33, %v753_v34 }
 0x12d   :  { %v3953_v39 = vcombine.low %v877_v35, %v881_v37  ;;  %v725_v29 = vld [vmem:[#allocation7 + $0x108] sm:$0xff] }
 0x12e   :  { %2287 = vmatpush2.bf16.msra.mxu1 %v3887_v40  ;;  %2330 = vmatpush2.bf16.msra.mxu0 %v4015_v41  ;;  %v3954_v40 = vcombine.high %v877_v35, %v881_v37  ;;  %v268_v41 = vsub.s32 3, %v4651_v15  ;;  %v717_v37 = vld [vmem:[#allocation7 + $0xc8] sm:$0xff] }
 0x12f   :  { %2288 = vmatprep.subr.bf16.mxu1 %v3880_v42  ;;  %2331 = vmatprep.subr.bf16.mxu0 %v4008_v43  ;;  %v264_v42 = vsub.s32 2, %v4651_v15  ;;  %v252_v43 = vld [vmem:[%s4755_s4] sm:$0xf] }
 0x130   :  { %v261_v46 = vrot.slane %v252_v43, %v4654_v16  ;;  %v269_v47 = vrot.slane %v252_v43, %v268_v41 }
 0x132   :  { %2289 = vmatpush2.bf16.msra.mxu1 %v3879_v48  ;;  %2332 = vmatpush2.bf16.msra.mxu0 %v4007_v49  ;;  %v257_v48 = vrot.slane %v252_v43, %v4657_v17  ;;  %v265_v49 = vrot.slane %v252_v43, %v264_v42 }
 0x133   :  { %2290 = vmatprep.subr.bf16.mxu1 %v3872_v50  ;;  %2333 = vmatprep.subr.bf16.mxu0 %v4000_v51 }
 0x136   :  { %2291 = vmatpush2.bf16.msra.mxu1 %v3871_v56  ;;  %2334 = vmatpush2.bf16.msra.mxu0 %v3999_v57 }
 0x137   :  { %2292 = vmatprep.subr.bf16.mxu1 %v3864_v58  ;;  %2335 = vmatprep.subr.bf16.mxu0 %v3992_v59 }
 0x13a   :  { %2293 = vmatpush2.bf16.msra.mxu1 %v3863_v0  ;;  %2336 = vmatpush2.bf16.msra.mxu0 %v3991_v1 }
 0x13b   :  { %2294 = vmatprep.subr.bf16.mxu1 %v3856_v2  ;;  %2337 = vmatprep.subr.bf16.mxu0 %v3984_v3 }
 0x13e   :  { %2295 = vmatpush2.bf16.msra.mxu1 %v3855_v4  ;;  %2338 = vmatpush2.bf16.msra.mxu0 %v3983_v5 }
 0x13f   :  { %2296 = vmatprep.subr.bf16.mxu1 %v3848_v9  ;;  %2339 = vmatprep.subr.bf16.mxu0 %v3976_v13  ;;  %v745_v9 = vld [vmem:[#allocation7 + $0x1a8] sm:$0xff] }
 0x140   :  { %v3817_v25 = vcombine.low %v741_v6, %v745_v9 }
 0x142   :  { %2297 = vmatpush2.bf16.msra.mxu1 %v3847_v11  ;;  %2340 = vmatpush2.bf16.msra.mxu0 %v3975_v12  ;;  %v873_v11 = vld [vmem:[#allocation7 + $0x5a8] sm:$0xff] }
 0x143   :  { %2298 = vmatprep.subr.bf16.mxu1 %v3840_v20  ;;  %2341 = vmatprep.subr.bf16.mxu0 %v3968_v24  ;;  %v3818_v20 = vcombine.high %v741_v6, %v745_v9  ;;  %v3946_v21 = vcombine.high %v869_v10, %v873_v11  ;;  %v865_v24 = vld [vmem:[#allocation7 + $0x568] sm:$0xff]  ;;  %v3945_v26 = vcombine.low %v869_v10, %v873_v11 }
 0x144   :  { %v941_v9 = vld [vmem:[#allocation7 + $0x7c8] sm:$0xff] }
 0x145   :  { %v945_v10 = vld [vmem:[#allocation7 + $0x7e8] sm:$0xff] }
 0x146   :  { %2299 = vmatpush2.bf16.msra.mxu1 %v3839_v22  ;;  %2342 = vmatpush2.bf16.msra.mxu0 %v3967_v23  ;;  %v737_v22 = vld [vmem:[#allocation7 + $0x168] sm:$0xff] }
 0x147   :  { %2300 = vmatprep.subr.bf16.mxu1 %v3832_v28  ;;  %2343 = vmatprep.subr.bf16.mxu0 %v3960_v32  ;;  %v861_v23 = vld [vmem:[#allocation7 + $0x548] sm:$0xff]  ;;  %v3810_v27 = vcombine.high %v733_v19, %v737_v22  ;;  %v3809_v33 = vcombine.low %v733_v19, %v737_v22 }
 0x148   :  { %v3938_v28 = vcombine.high %v861_v23, %v865_v24  ;;  %v857_v32 = vld [vmem:[#allocation7 + $0x528] sm:$0xff]  ;;  %v3937_v34 = vcombine.low %v861_v23, %v865_v24 }
 0x149   :  { %v805_v22 = vld [vmem:[#allocation7 + $0x388] sm:$0xff] }
 0x14a   :  { %2301 = vmatpush2.bf16.msra.mxu1 %v3831_v30  ;;  %2344 = vmatpush2.bf16.msra.mxu0 %v3959_v31  ;;  %v729_v30 = vld [vmem:[#allocation7 + $0x128] sm:$0xff] }
 0x14b   :  { %2356 = vmatprep.subr.bf16.mxu1 %v3826_v36  ;;  %2399 = vmatprep.subr.bf16.mxu0 %v3954_v40  ;;  %v853_v31 = vld [vmem:[#allocation7 + $0x508] sm:$0xff]  ;;  %v3802_v35 = vcombine.high %v725_v29, %v729_v30  ;;  %v3801_v43 = vcombine.low %v725_v29, %v729_v30 }
 0x14c   :  { %v3930_v36 = vcombine.high %v853_v31, %v857_v32  ;;  %v849_v40 = vld [vmem:[#allocation7 + $0x4e8] sm:$0xff] }
 0x14d   :  { %v809_v23 = vld [vmem:[#allocation7 + $0x3a8] sm:$0xff] }
 0x14e   :  { %v933_v24 = vld [vmem:[#allocation7 + $0x788] sm:$0xff] }
 0x14f   :  { %v797_v30 = vld [vmem:[#allocation7 + $0x348] sm:$0xff] }
 0x1cd   :  { %v628_v44 = vpop.f32.mrf.mxu1  ;;  %v671_v45 = vpop.f32.mrf.mxu0 }
 0x1ce   :  { %v629_v58 = vadd.f32 %v628_v44, %v257_v48  ;;  %v672_v59 = vadd.f32 %v671_v45, %v265_v49  ;;  %v3929_v44 = vcombine.low %v853_v31, %v857_v32  ;;  %v801_v31 = vld [vmem:[#allocation7 + $0x368] sm:$0xff] }
 0x1cf   :  { %v630_v50 = vpop.f32.mrf.mxu1  ;;  %v673_v51 = vpop.f32.mrf.mxu0  ;;  %v925_v32 = vld [vmem:[#allocation7 + $0x748] sm:$0xff] }
 0x1d0   :  { %v631_v54 = vadd.f32 %v630_v50, %v261_v46  ;;  %v674_v55 = vadd.f32 %v673_v51, %v269_v47  ;;  %v680_v7 = vmax.f32 %v629_v58, 0.0  ;;  %v682_v8 = vmax.f32 %v672_v59, 0.0  ;;  %v841_v50 = vld [vmem:[#allocation7 + $0x4a8] sm:$0xff] }
 0x1d1   :  { %v632_v52 = vpop.f32.mrf.mxu1  ;;  %v675_v53 = vpop.f32.mrf.mxu0  ;;  %v833_v58 = vld [vmem:[#allocation7 + $0x468] sm:$0xff] }
 0x1d2   :  { %v633_v56 = vadd.f32 %v632_v52, %v257_v48  ;;  %v676_v57 = vadd.f32 %v675_v53, %v265_v49  ;;  %v681_v2 = vmax.f32 %v631_v54, 0.0  ;;  %v683_v3 = vmax.f32 %v674_v55, 0.0  ;;  %v713_v48 = vld [vmem:[#allocation7 + $0xa8] sm:$0xff] }
 0x1d3   :  { %v634_v60 = vpop.f32.mrf.mxu1  ;;  %v677_v61 = vpop.f32.mrf.mxu0  ;;  %v837_v49 = vld [vmem:[#allocation7 + $0x488] sm:$0xff] }
 0x1d4   :  { %v635_v62 = vadd.f32 %v634_v60, %v261_v46  ;;  %v678_v63 = vadd.f32 %v677_v61, %v269_v47  ;;  %v684_v0 = vmax.f32 %v633_v56, 0.0  ;;  %v686_v1 = vmax.f32 %v676_v57, 0.0  ;;  %v709_v47 = vld [vmem:[#allocation7 + $0x88] sm:$0xff] }
 0x1d5   :  { %v3786_v53 = vcombine.high %v709_v47, %v713_v48  ;;  %v3914_v54 = vcombine.high %v837_v49, %v841_v50  ;;  %v701_v55 = vld [vmem:[#allocation7 + $0x48] sm:$0xff]  ;;  %v3785_v59 = vcombine.low %v709_v47, %v713_v48  ;;  %v3913_v60 = vcombine.low %v837_v49, %v841_v50 }
 0x1d6   :  { %v685_v4 = vmax.f32 %v635_v62, 0.0  ;;  %v687_v5 = vmax.f32 %v678_v63, 0.0  ;;  %v4679_v14 = vpack.c.bf16 %v684_v0, %v680_v7  ;;  %v4681_v18 = vpack.c.bf16 %v686_v1, %v682_v8  ;;  %v705_v56 = vld [vmem:[#allocation7 + $0x68] sm:$0xff] }
 0x1d7   :  { %v829_v57 = vld [vmem:[#allocation7 + $0x448] sm:$0xff]  ;;  %v3778_v61 = vcombine.high %v701_v55, %v705_v56 }
 0x1d8   :  { %v4675_v12 = vpack.c.bf16 %v685_v4, %v681_v2  ;;  %v4677_v13 = vpack.c.bf16 %v687_v5, %v683_v3  ;;  %v3906_v62 = vcombine.high %v829_v57, %v833_v58  ;;  %v693_v63 = vld [vmem:[#allocation7 + $0x8] sm:$0xff]  ;;  %v3777_v3 = vcombine.low %v701_v55, %v705_v56 }
 0x1d9   :  { %v697_v0 = vld [vmem:[#allocation7 + $0x28] sm:$0xff]  ;;  %v3905_v4 = vcombine.low %v829_v57, %v833_v58 }
 0x1da   :  { %2302 = vmatprep.mubr.bf16.mxu1 %v4675_v12  ;;  %2345 = vmatprep.mubr.bf16.mxu0 %v4677_v13  ;;  %v821_v1 = vld [vmem:[#allocation7 + $0x408] sm:$0xff]  ;;  %v3770_v5 = vcombine.high %v693_v63, %v697_v0  ;;  %v3769_v11 = vcombine.low %v693_v63, %v697_v0 }
 0x1db   :  { %2303 = vmatmul.mubr.bf16.vlgmr.msra.gmra.mxu1 %v4679_v14  ;;  %2346 = vmatmul.mubr.bf16.vlgmr.msra.gmra.mxu0 %v4681_v18  ;;  %v825_v2 = vld [vmem:[#allocation7 + $0x428] sm:$0xff] }
 0x1dc   :  { %2357 = vmatpush1.bf16.msra.mxu1 %v3825_v38  ;;  %2400 = vmatpush1.bf16.msra.mxu0 %v3953_v39  ;;  %v721_v38 = vld [vmem:[#allocation7 + $0xe8] sm:$0xff]  ;;  %v3898_v6 = vcombine.high %v821_v1, %v825_v2  ;;  %v3897_v19 = vcombine.low %v821_v1, %v825_v2 }
 0x1dd   :  { %2388 = vmatprep.mubr.bf16.mxu1 %v4675_v12  ;;  %2431 = vmatprep.mubr.bf16.mxu0 %v4677_v13  ;;  %v845_v39 = vld [vmem:[#allocation7 + $0x4c8] sm:$0xff]  ;;  %v3794_v45 = vcombine.high %v717_v37, %v721_v38  ;;  %v3793_v51 = vcombine.low %v717_v37, %v721_v38 }
 0x1de   :  { %2358 = vmatprep.subr.bf16.mxu1 %v3818_v20  ;;  %2401 = vmatprep.subr.bf16.mxu0 %v3946_v21  ;;  %v3922_v46 = vcombine.high %v845_v39, %v849_v40  ;;  %v3921_v52 = vcombine.low %v845_v39, %v849_v40  ;;  %v813_v7 = vld [vmem:[#allocation7 + $0x3c8] sm:$0xff]  ;;  %v4018_v21 = vcombine.high %v941_v9, %v945_v10 }
 0x1df   :  { %v817_v8 = vld [vmem:[#allocation7 + $0x3e8] sm:$0xff] }
 0x1e0   :  { %2359 = vmatpush1.bf16.msra.mxu1 %v3817_v25  ;;  %2402 = vmatpush1.bf16.msra.mxu0 %v3945_v26  ;;  %v3890_v20 = vcombine.high %v813_v7, %v817_v8  ;;  %v937_v25 = vld [vmem:[#allocation7 + $0x7a8] sm:$0xff]  ;;  %v3889_v26 = vcombine.low %v813_v7, %v817_v8 }
 0x1e1   :  { %2360 = vmatprep.subr.bf16.mxu1 %v3810_v27  ;;  %2403 = vmatprep.subr.bf16.mxu0 %v3938_v28  ;;  %v4017_v27 = vcombine.low %v941_v9, %v945_v10  ;;  %v3882_v28 = vcombine.high %v805_v22, %v809_v23  ;;  %v4010_v29 = vcombine.high %v933_v24, %v937_v25  ;;  %v789_v38 = vld [vmem:[#allocation7 + $0x308] sm:$0xff] }
 0x1e2   :  { %v793_v39 = vld [vmem:[#allocation7 + $0x328] sm:$0xff] }
 0x1e3   :  { %v917_v40 = vld [vmem:[#allocation7 + $0x708] sm:$0xff] }
 0x1e4   :  { %2361 = vmatpush1.bf16.msra.mxu1 %v3809_v33  ;;  %2404 = vmatpush1.bf16.msra.mxu0 %v3937_v34  ;;  %v929_v33 = vld [vmem:[#allocation7 + $0x768] sm:$0xff]  ;;  %v3881_v34 = vcombine.low %v805_v22, %v809_v23  ;;  %v750_v23 = vld [vmem:[#allocation7 + $0x1d0] sm:$0xff] }
 0x1e5   :  { %2362 = vmatprep.subr.bf16.mxu1 %v3802_v35  ;;  %2405 = vmatprep.subr.bf16.mxu0 %v3930_v36  ;;  %v4009_v35 = vcombine.low %v933_v24, %v937_v25  ;;  %v3874_v36 = vcombine.high %v797_v30, %v801_v31  ;;  %v4002_v37 = vcombine.high %v925_v32, %v929_v33  ;;  %v781_v48 = vld [vmem:[#allocation7 + $0x2c8] sm:$0xff]  ;;  %v754_v24 = vld [vmem:[#allocation7 + $0x1f0] sm:$0xff] }
 0x1e6   :  { %v785_v49 = vld [vmem:[#allocation7 + $0x2e8] sm:$0xff]  ;;  %v878_v25 = vld [vmem:[#allocation7 + $0x5d0] sm:$0xff] }
 0x1e7   :  { %v909_v50 = vld [vmem:[#allocation7 + $0x6c8] sm:$0xff] }
 0x1e8   :  { %2363 = vmatpush1.bf16.msra.mxu1 %v3801_v43  ;;  %2406 = vmatpush1.bf16.msra.mxu0 %v3929_v44  ;;  %v921_v43 = vld [vmem:[#allocation7 + $0x728] sm:$0xff]  ;;  %v3873_v44 = vcombine.low %v797_v30, %v801_v31  ;;  %v742_v31 = vld [vmem:[#allocation7 + $0x190] sm:$0xff] }
 0x1e9   :  { %2364 = vmatprep.subr.bf16.mxu1 %v3794_v45  ;;  %2407 = vmatprep.subr.bf16.mxu0 %v3922_v46  ;;  %v4001_v45 = vcombine.low %v925_v32, %v929_v33  ;;  %v3866_v46 = vcombine.high %v789_v38, %v793_v39  ;;  %v3994_v47 = vcombine.high %v917_v40, %v921_v43  ;;  %v773_v56 = vld [vmem:[#allocation7 + $0x288] sm:$0xff]  ;;  %v746_v32 = vld [vmem:[#allocation7 + $0x1b0] sm:$0xff] }
 0x1ea   :  { %v777_v57 = vld [vmem:[#allocation7 + $0x2a8] sm:$0xff]  ;;  %v870_v33 = vld [vmem:[#allocation7 + $0x590] sm:$0xff] }
 0x1eb   :  { %v901_v58 = vld [vmem:[#allocation7 + $0x688] sm:$0xff] }
 0x1ec   :  { %2365 = vmatpush1.bf16.msra.mxu1 %v3793_v51  ;;  %2408 = vmatpush1.bf16.msra.mxu0 %v3921_v52  ;;  %v913_v51 = vld [vmem:[#allocation7 + $0x6e8] sm:$0xff]  ;;  %v3865_v52 = vcombine.low %v789_v38, %v793_v39  ;;  %v734_v39 = vld [vmem:[#allocation7 + $0x150] sm:$0xff] }
 0x1ed   :  { %2366 = vmatprep.subr.bf16.mxu1 %v3786_v53  ;;  %2409 = vmatprep.subr.bf16.mxu0 %v3914_v54  ;;  %v3993_v53 = vcombine.low %v917_v40, %v921_v43  ;;  %v3858_v54 = vcombine.high %v781_v48, %v785_v49  ;;  %v3986_v55 = vcombine.high %v909_v50, %v913_v51  ;;  %v765_v0 = vld [vmem:[#allocation7 + $0x248] sm:$0xff]  ;;  %v738_v40 = vld [vmem:[#allocation7 + $0x170] sm:$0xff] }
 0x1ee   :  { %v769_v1 = vld [vmem:[#allocation7 + $0x268] sm:$0xff]  ;;  %v862_v43 = vld [vmem:[#allocation7 + $0x550] sm:$0xff] }
 0x1ef   :  { %v893_v2 = vld [vmem:[#allocation7 + $0x648] sm:$0xff] }
 0x1f0   :  { %2367 = vmatpush1.bf16.msra.mxu1 %v3785_v59  ;;  %2410 = vmatpush1.bf16.msra.mxu0 %v3913_v60  ;;  %v905_v59 = vld [vmem:[#allocation7 + $0x6a8] sm:$0xff]  ;;  %v3857_v60 = vcombine.low %v781_v48, %v785_v49  ;;  %v726_v49 = vld [vmem:[#allocation7 + $0x110] sm:$0xff] }
 0x1f1   :  { %2368 = vmatprep.subr.bf16.mxu1 %v3778_v61  ;;  %2411 = vmatprep.subr.bf16.mxu0 %v3906_v62  ;;  %v3985_v61 = vcombine.low %v909_v50, %v913_v51  ;;  %v3850_v62 = vcombine.high %v773_v56, %v777_v57  ;;  %v3978_v63 = vcombine.high %v901_v58, %v905_v59  ;;  %v757_v8 = vld [vmem:[#allocation7 + $0x208] sm:$0xff]  ;;  %v730_v50 = vld [vmem:[#allocation7 + $0x130] sm:$0xff] }
 0x1f2   :  { %v761_v9 = vld [vmem:[#allocation7 + $0x228] sm:$0xff]  ;;  %v854_v51 = vld [vmem:[#allocation7 + $0x510] sm:$0xff] }
 0x1f3   :  { %v885_v10 = vld [vmem:[#allocation7 + $0x608] sm:$0xff] }
 0x1f4   :  { %2369 = vmatpush1.bf16.msra.mxu1 %v3777_v3  ;;  %2412 = vmatpush1.bf16.msra.mxu0 %v3905_v4  ;;  %v897_v3 = vld [vmem:[#allocation7 + $0x668] sm:$0xff]  ;;  %v3849_v4 = vcombine.low %v773_v56, %v777_v57  ;;  %v718_v57 = vld [vmem:[#allocation7 + $0xd0] sm:$0xff] }
 0x1f5   :  { %2370 = vmatprep.subr.bf16.mxu1 %v3770_v5  ;;  %2413 = vmatprep.subr.bf16.mxu0 %v3898_v6  ;;  %v3977_v5 = vcombine.low %v901_v58, %v905_v59  ;;  %v3842_v6 = vcombine.high %v765_v0, %v769_v1  ;;  %v3970_v7 = vcombine.high %v893_v2, %v897_v3  ;;  %v722_v58 = vld [vmem:[#allocation7 + $0xf0] sm:$0xff] }
 0x1f6   :  { %v846_v59 = vld [vmem:[#allocation7 + $0x4d0] sm:$0xff] }
 0x1f8   :  { %2371 = vmatpush1.bf16.msra.mxu1 %v3769_v11  ;;  %2414 = vmatpush1.bf16.msra.mxu0 %v3897_v19  ;;  %v889_v11 = vld [vmem:[#allocation7 + $0x628] sm:$0xff]  ;;  %v3841_v19 = vcombine.low %v765_v0, %v769_v1  ;;  %v710_v1 = vld [vmem:[#allocation7 + $0x90] sm:$0xff] }
 0x1f9   :  { %2372 = vmatprep.subr.bf16.mxu1 %v3890_v20  ;;  %2415 = vmatprep.subr.bf16.mxu0 %v4018_v21  ;;  %v3969_v20 = vcombine.low %v893_v2, %v897_v3  ;;  %v3834_v21 = vcombine.high %v757_v8, %v761_v9  ;;  %v3962_v22 = vcombine.high %v885_v10, %v889_v11  ;;  %v714_v2 = vld [vmem:[#allocation7 + $0xb0] sm:$0xff] }
 0x1fa   :  { %v838_v3 = vld [vmem:[#allocation7 + $0x490] sm:$0xff] }
 0x1fc   :  { %2373 = vmatpush2.bf16.msra.mxu1 %v3889_v26  ;;  %2416 = vmatpush2.bf16.msra.mxu0 %v4017_v27  ;;  %v882_v26 = vld [vmem:[#allocation7 + $0x5f0] sm:$0xff]  ;;  %v3833_v27 = vcombine.low %v757_v8, %v761_v9 }
 0x1fd   :  { %2374 = vmatprep.subr.bf16.mxu1 %v3882_v28  ;;  %2417 = vmatprep.subr.bf16.mxu0 %v4010_v29  ;;  %v3961_v28 = vcombine.low %v885_v10, %v889_v11  ;;  %v3828_v29 = vcombine.high %v750_v23, %v754_v24  ;;  %v3956_v30 = vcombine.high %v878_v25, %v882_v26  ;;  %v702_v9 = vld [vmem:[#allocation7 + $0x50] sm:$0xff] }
 0x1fe   :  { %v706_v10 = vld [vmem:[#allocation7 + $0x70] sm:$0xff] }
 0x1ff   :  { %v830_v11 = vld [vmem:[#allocation7 + $0x450] sm:$0xff] }
 0x200   :  { %2375 = vmatpush2.bf16.msra.mxu1 %v3881_v34  ;;  %2418 = vmatpush2.bf16.msra.mxu0 %v4009_v35  ;;  %v874_v34 = vld [vmem:[#allocation7 + $0x5b0] sm:$0xff]  ;;  %v3827_v35 = vcombine.low %v750_v23, %v754_v24 }
 0x201   :  { %2376 = vmatprep.subr.bf16.mxu1 %v3874_v36  ;;  %2419 = vmatprep.subr.bf16.mxu0 %v4002_v37  ;;  %v3955_v36 = vcombine.low %v878_v25, %v882_v26  ;;  %v3820_v37 = vcombine.high %v742_v31, %v746_v32  ;;  %v3948_v38 = vcombine.high %v870_v33, %v874_v34  ;;  %v694_v24 = vld [vmem:[#allocation7 + $0x10] sm:$0xff] }
 0x202   :  { %v698_v25 = vld [vmem:[#allocation7 + $0x30] sm:$0xff] }
 0x203   :  { %v822_v26 = vld [vmem:[#allocation7 + $0x410] sm:$0xff] }
 0x204   :  { %2377 = vmatpush2.bf16.msra.mxu1 %v3873_v44  ;;  %2420 = vmatpush2.bf16.msra.mxu0 %v4001_v45  ;;  %v866_v44 = vld [vmem:[#allocation7 + $0x570] sm:$0xff]  ;;  %v3819_v45 = vcombine.low %v742_v31, %v746_v32 }
 0x205   :  { %2378 = vmatprep.subr.bf16.mxu1 %v3866_v46  ;;  %2421 = vmatprep.subr.bf16.mxu0 %v3994_v47  ;;  %v3947_v46 = vcombine.low %v870_v33, %v874_v34  ;;  %v3812_v47 = vcombine.high %v734_v39, %v738_v40  ;;  %v3940_v48 = vcombine.high %v862_v43, %v866_v44  ;;  %v814_v32 = vld [vmem:[#allocation7 + $0x3d0] sm:$0xff] }
 0x206   :  { %v818_v33 = vld [vmem:[#allocation7 + $0x3f0] sm:$0xff] }
 0x207   :  { %v942_v34 = vld [vmem:[#allocation7 + $0x7d0] sm:$0xff] }
 0x208   :  { %2379 = vmatpush2.bf16.msra.mxu1 %v3865_v52  ;;  %2422 = vmatpush2.bf16.msra.mxu0 %v3993_v53  ;;  %v858_v52 = vld [vmem:[#allocation7 + $0x530] sm:$0xff]  ;;  %v3811_v53 = vcombine.low %v734_v39, %v738_v40 }
 0x209   :  { %2380 = vmatprep.subr.bf16.mxu1 %v3858_v54  ;;  %2423 = vmatprep.subr.bf16.mxu0 %v3986_v55  ;;  %v3939_v54 = vcombine.low %v862_v43, %v866_v44  ;;  %v3804_v55 = vcombine.high %v726_v49, %v730_v50  ;;  %v3932_v56 = vcombine.high %v854_v51, %v858_v52  ;;  %v806_v40 = vld [vmem:[#allocation7 + $0x390] sm:$0xff] }
 0x20a   :  { %v810_v43 = vld [vmem:[#allocation7 + $0x3b0] sm:$0xff] }
 0x20b   :  { %v934_v44 = vld [vmem:[#allocation7 + $0x790] sm:$0xff] }
 0x20c   :  { %2381 = vmatpush2.bf16.msra.mxu1 %v3857_v60  ;;  %2424 = vmatpush2.bf16.msra.mxu0 %v3985_v61  ;;  %v850_v60 = vld [vmem:[#allocation7 + $0x4f0] sm:$0xff]  ;;  %v3803_v61 = vcombine.low %v726_v49, %v730_v50 }
 0x20d   :  { %2382 = vmatprep.subr.bf16.mxu1 %v3850_v62  ;;  %2425 = vmatprep.subr.bf16.mxu0 %v3978_v63  ;;  %v3931_v62 = vcombine.low %v854_v51, %v858_v52  ;;  %v3796_v63 = vcombine.high %v718_v57, %v722_v58  ;;  %v3924_v0 = vcombine.high %v846_v59, %v850_v60  ;;  %v798_v50 = vld [vmem:[#allocation7 + $0x350] sm:$0xff] }
 0x20e   :  { %v802_v51 = vld [vmem:[#allocation7 + $0x370] sm:$0xff] }
 0x20f   :  { %v926_v52 = vld [vmem:[#allocation7 + $0x750] sm:$0xff] }
 0x210   :  { %2383 = vmatpush2.bf16.msra.mxu1 %v3849_v4  ;;  %2426 = vmatpush2.bf16.msra.mxu0 %v3977_v5  ;;  %v842_v4 = vld [vmem:[#allocation7 + $0x4b0] sm:$0xff]  ;;  %v3795_v5 = vcombine.low %v718_v57, %v722_v58 }
 0x211   :  { %2384 = vmatprep.subr.bf16.mxu1 %v3842_v6  ;;  %2427 = vmatprep.subr.bf16.mxu0 %v3970_v7  ;;  %v3923_v6 = vcombine.low %v846_v59, %v850_v60  ;;  %v3788_v7 = vcombine.high %v710_v1, %v714_v2  ;;  %v3916_v8 = vcombine.high %v838_v3, %v842_v4  ;;  %v790_v58 = vld [vmem:[#allocation7 + $0x310] sm:$0xff] }
 0x212   :  { %v794_v59 = vld [vmem:[#allocation7 + $0x330] sm:$0xff] }
 0x213   :  { %v918_v60 = vld [vmem:[#allocation7 + $0x710] sm:$0xff] }
 0x214   :  { %2385 = vmatpush2.bf16.msra.mxu1 %v3841_v19  ;;  %2428 = vmatpush2.bf16.msra.mxu0 %v3969_v20  ;;  %v834_v19 = vld [vmem:[#allocation7 + $0x470] sm:$0xff]  ;;  %v3787_v20 = vcombine.low %v710_v1, %v714_v2 }
 0x215   :  { %2386 = vmatprep.subr.bf16.mxu1 %v3834_v21  ;;  %2429 = vmatprep.subr.bf16.mxu0 %v3962_v22  ;;  %v3915_v21 = vcombine.low %v838_v3, %v842_v4  ;;  %v3780_v22 = vcombine.high %v702_v9, %v706_v10  ;;  %v3908_v23 = vcombine.high %v830_v11, %v834_v19  ;;  %v782_v2 = vld [vmem:[#allocation7 + $0x2d0] sm:$0xff] }
 0x216   :  { %v786_v3 = vld [vmem:[#allocation7 + $0x2f0] sm:$0xff] }
 0x217   :  { %v910_v4 = vld [vmem:[#allocation7 + $0x6d0] sm:$0xff] }
 0x218   :  { %2387 = vmatpush2.bf16.msra.mxu1 %v3833_v27  ;;  %2430 = vmatpush2.bf16.msra.mxu0 %v3961_v28  ;;  %v826_v27 = vld [vmem:[#allocation7 + $0x430] sm:$0xff]  ;;  %v3779_v28 = vcombine.low %v702_v9, %v706_v10 }
 0x219   :  { %2442 = vmatprep.subr.bf16.mxu1 %v3828_v29  ;;  %2485 = vmatprep.subr.bf16.mxu0 %v3956_v30  ;;  %v3907_v29 = vcombine.low %v830_v11, %v834_v19  ;;  %v3772_v30 = vcombine.high %v694_v24, %v698_v25  ;;  %v3900_v31 = vcombine.high %v822_v26, %v826_v27  ;;  %v774_v10 = vld [vmem:[#allocation7 + $0x290] sm:$0xff] }
 0x21a   :  { %v778_v11 = vld [vmem:[#allocation7 + $0x2b0] sm:$0xff] }
 0x21b   :  { %2389 = vmatmul.mubr.bf16.vlgmr.msra.gmra.mxu1 %v4679_v14  ;;  %2432 = vmatmul.mubr.bf16.vlgmr.msra.gmra.mxu0 %v4681_v18  ;;  %v902_v19 = vld [vmem:[#allocation7 + $0x690] sm:$0xff] }
 0x21c   :  { %2443 = vmatpush1.bf16.msra.mxu1 %v3827_v35  ;;  %2474 = vmatprep.mubr.bf16.mxu1 %v4675_v12  ;;  %v946_v35 = vld [vmem:[#allocation7 + $0x7f0] sm:$0xff] }
 0x21d   :  { %2486 = vmatpush1.bf16.msra.mxu0 %v3955_v36  ;;  %2517 = vmatprep.mubr.bf16.mxu0 %v4677_v13  ;;  %v3771_v36 = vcombine.low %v694_v24, %v698_v25  ;;  %v4020_v39 = vcombine.high %v942_v34, %v946_v35  ;;  %v766_v25 = vld [vmem:[#allocation7 + $0x250] sm:$0xff] }
 0x21e   :  { %2444 = vmatprep.subr.bf16.mxu1 %v3820_v37  ;;  %2487 = vmatprep.subr.bf16.mxu0 %v3948_v38  ;;  %v3899_v37 = vcombine.low %v822_v26, %v826_v27  ;;  %v3892_v38 = vcombine.high %v814_v32, %v818_v33  ;;  %v770_v26 = vld [vmem:[#allocation7 + $0x270] sm:$0xff] }
 0x21f   :  { %v894_v27 = vld [vmem:[#allocation7 + $0x650] sm:$0xff] }
 0x220   :  { %2445 = vmatpush1.bf16.msra.mxu1 %v3819_v45  ;;  %v938_v45 = vld [vmem:[#allocation7 + $0x7b0] sm:$0xff] }
 0x221   :  { %2488 = vmatpush1.bf16.msra.mxu0 %v3947_v46  ;;  %2446 = vmatprep.subr.bf16.mxu1 %v3812_v47  ;;  %v3891_v46 = vcombine.low %v814_v32, %v818_v33  ;;  %v4019_v47 = vcombine.low %v942_v34, %v946_v35  ;;  %v4012_v49 = vcombine.high %v934_v44, %v938_v45  ;;  %v758_v33 = vld [vmem:[#allocation7 + $0x210] sm:$0xff] }
 0x222   :  { %2489 = vmatprep.subr.bf16.mxu0 %v3940_v48  ;;  %v3884_v48 = vcombine.high %v806_v40, %v810_v43  ;;  %v762_v34 = vld [vmem:[#allocation7 + $0x230] sm:$0xff] }
 0x223   :  { %v886_v35 = vld [vmem:[#allocation7 + $0x610] sm:$0xff] }
 0x224   :  { %2447 = vmatpush1.bf16.msra.mxu1 %v3811_v53  ;;  %v930_v53 = vld [vmem:[#allocation7 + $0x770] sm:$0xff] }
 0x225   :  { %2490 = vmatpush1.bf16.msra.mxu0 %v3939_v54  ;;  %2448 = vmatprep.subr.bf16.mxu1 %v3804_v55  ;;  %v3883_v54 = vcombine.low %v806_v40, %v810_v43  ;;  %v4011_v55 = vcombine.low %v934_v44, %v938_v45  ;;  %v4004_v57 = vcombine.high %v926_v52, %v930_v53  ;;  %v751_v43 = vld [vmem:[#allocation7 + $0x1d8] sm:$0xff] }
 0x226   :  { %2491 = vmatprep.subr.bf16.mxu0 %v3932_v56  ;;  %v3876_v56 = vcombine.high %v798_v50, %v802_v51  ;;  %v755_v44 = vld [vmem:[#allocation7 + $0x1f8] sm:$0xff] }
 0x227   :  { %v879_v45 = vld [vmem:[#allocation7 + $0x5d8] sm:$0xff] }
 0x228   :  { %2449 = vmatpush1.bf16.msra.mxu1 %v3803_v61  ;;  %v922_v61 = vld [vmem:[#allocation7 + $0x730] sm:$0xff] }
 0x229   :  { %2492 = vmatpush1.bf16.msra.mxu0 %v3931_v62  ;;  %2450 = vmatprep.subr.bf16.mxu1 %v3796_v63  ;;  %v3875_v62 = vcombine.low %v798_v50, %v802_v51  ;;  %v4003_v63 = vcombine.low %v926_v52, %v930_v53  ;;  %v3996_v1 = vcombine.high %v918_v60, %v922_v61  ;;  %v743_v51 = vld [vmem:[#allocation7 + $0x198] sm:$0xff] }
 0x22a   :  { %2493 = vmatprep.subr.bf16.mxu0 %v3924_v0  ;;  %v3868_v0 = vcombine.high %v790_v58, %v794_v59  ;;  %v747_v52 = vld [vmem:[#allocation7 + $0x1b8] sm:$0xff]  ;;  %v3829_v53 = vcombine.low %v751_v43, %v755_v44 }
 0x22c   :  { %2451 = vmatpush1.bf16.msra.mxu1 %v3795_v5  ;;  %v914_v5 = vld [vmem:[#allocation7 + $0x6f0] sm:$0xff] }
 0x22d   :  { %2494 = vmatpush1.bf16.msra.mxu0 %v3923_v6  ;;  %2452 = vmatprep.subr.bf16.mxu1 %v3788_v7  ;;  %v3867_v6 = vcombine.low %v790_v58, %v794_v59  ;;  %v3995_v7 = vcombine.low %v918_v60, %v922_v61  ;;  %v3988_v9 = vcombine.high %v910_v4, %v914_v5  ;;  %v735_v58 = vld [vmem:[#allocation7 + $0x158] sm:$0xff] }
 0x22e   :  { %2495 = vmatprep.subr.bf16.mxu0 %v3916_v8  ;;  %v3860_v8 = vcombine.high %v782_v2, %v786_v3  ;;  %v739_v59 = vld [vmem:[#allocation7 + $0x178] sm:$0xff] }
 0x22f   :  { %v863_v61 = vld [vmem:[#allocation7 + $0x558] sm:$0xff] }
 0x230   :  { %2453 = vmatpush1.bf16.msra.mxu1 %v3787_v20  ;;  %v906_v20 = vld [vmem:[#allocation7 + $0x6b0] sm:$0xff] }
 0x231   :  { %2496 = vmatpush1.bf16.msra.mxu0 %v3915_v21  ;;  %2454 = vmatprep.subr.bf16.mxu1 %v3780_v22  ;;  %v3859_v21 = vcombine.low %v782_v2, %v786_v3  ;;  %v3987_v22 = vcombine.low %v910_v4, %v914_v5  ;;  %v3980_v24 = vcombine.high %v902_v19, %v906_v20  ;;  %v727_v3 = vld [vmem:[#allocation7 + $0x118] sm:$0xff] }
 0x232   :  { %2497 = vmatprep.subr.bf16.mxu0 %v3908_v23  ;;  %v3852_v23 = vcombine.high %v774_v10, %v778_v11  ;;  %v731_v4 = vld [vmem:[#allocation7 + $0x138] sm:$0xff] }
 0x233   :  { %v855_v5 = vld [vmem:[#allocation7 + $0x518] sm:$0xff] }
 0x234   :  { %2455 = vmatpush1.bf16.msra.mxu1 %v3779_v28  ;;  %v898_v28 = vld [vmem:[#allocation7 + $0x670] sm:$0xff] }
 0x235   :  { %2498 = vmatpush1.bf16.msra.mxu0 %v3907_v29  ;;  %2456 = vmatprep.subr.bf16.mxu1 %v3772_v30  ;;  %v3851_v29 = vcombine.low %v774_v10, %v778_v11  ;;  %v3979_v30 = vcombine.low %v902_v19, %v906_v20  ;;  %v3972_v32 = vcombine.high %v894_v27, %v898_v28  ;;  %v719_v10 = vld [vmem:[#allocation7 + $0xd8] sm:$0xff] }
 0x236   :  { %2499 = vmatprep.subr.bf16.mxu0 %v3900_v31  ;;  %v3844_v31 = vcombine.high %v766_v25, %v770_v26  ;;  %v723_v11 = vld [vmem:[#allocation7 + $0xf8] sm:$0xff] }
 0x237   :  { %v847_v19 = vld [vmem:[#allocation7 + $0x4d8] sm:$0xff] }
 0x238   :  { %2457 = vmatpush1.bf16.msra.mxu1 %v3771_v36  ;;  %v890_v36 = vld [vmem:[#allocation7 + $0x630] sm:$0xff]  ;;  %v851_v20 = vld [vmem:[#allocation7 + $0x4f8] sm:$0xff] }
 0x239   :  { %2500 = vmatpush1.bf16.msra.mxu0 %v3899_v37  ;;  %2458 = vmatprep.subr.bf16.mxu1 %v3892_v38  ;;  %v3843_v37 = vcombine.low %v766_v25, %v770_v26  ;;  %v3971_v38 = vcombine.low %v894_v27, %v898_v28  ;;  %v3964_v40 = vcombine.high %v886_v35, %v890_v36  ;;  %v715_v25 = vld [vmem:[#allocation7 + $0xb8] sm:$0xff] }
 0x23a   :  { %2501 = vmatprep.subr.bf16.mxu0 %v4020_v39  ;;  %v3836_v39 = vcombine.high %v758_v33, %v762_v34  ;;  %v839_v26 = vld [vmem:[#allocation7 + $0x498] sm:$0xff]  ;;  %v3797_v28 = vcombine.low %v719_v10, %v723_v11 }
 0x23b   :  { %v843_v27 = vld [vmem:[#allocation7 + $0x4b8] sm:$0xff] }
 0x23c   :  { %2459 = vmatpush2.bf16.msra.mxu1 %v3891_v46  ;;  %v883_v46 = vld [vmem:[#allocation7 + $0x5f8] sm:$0xff] }
 0x23d   :  { %2502 = vmatpush2.bf16.msra.mxu0 %v4019_v47  ;;  %2460 = vmatprep.subr.bf16.mxu1 %v3884_v48  ;;  %v3835_v47 = vcombine.low %v758_v33, %v762_v34  ;;  %v3963_v48 = vcombine.low %v886_v35, %v890_v36  ;;  %v3958_v50 = vcombine.high %v879_v45, %v883_v46  ;;  %v707_v33 = vld [vmem:[#allocation7 + $0x78] sm:$0xff] }
 0x23e   :  { %2503 = vmatprep.subr.bf16.mxu0 %v4012_v49  ;;  %v3830_v49 = vcombine.high %v751_v43, %v755_v44  ;;  %v831_v34 = vld [vmem:[#allocation7 + $0x458] sm:$0xff] }
 0x23f   :  { %v835_v35 = vld [vmem:[#allocation7 + $0x478] sm:$0xff] }
 0x240   :  { %2461 = vmatpush2.bf16.msra.mxu1 %v3883_v54  ;;  %v871_v54 = vld [vmem:[#allocation7 + $0x598] sm:$0xff] }
 0x241   :  { %2504 = vmatpush2.bf16.msra.mxu0 %v4011_v55  ;;  %2462 = vmatprep.subr.bf16.mxu1 %v3876_v56  ;;  %v875_v55 = vld [vmem:[#allocation7 + $0x5b8] sm:$0xff]  ;;  %v3957_v56 = vcombine.low %v879_v45, %v883_v46 }
 0x242   :  { %2505 = vmatprep.subr.bf16.mxu0 %v4004_v57  ;;  %v3822_v57 = vcombine.high %v743_v51, %v747_v52  ;;  %v3950_v60 = vcombine.high %v871_v54, %v875_v55  ;;  %v699_v43 = vld [vmem:[#allocation7 + $0x38] sm:$0xff] }
 0x243   :  { %v823_v44 = vld [vmem:[#allocation7 + $0x418] sm:$0xff] }
 0x244   :  { %2463 = vmatpush2.bf16.msra.mxu1 %v3875_v62  ;;  %v867_v62 = vld [vmem:[#allocation7 + $0x578] sm:$0xff] }
 0x245   :  { %2506 = vmatpush2.bf16.msra.mxu0 %v4003_v63  ;;  %2464 = vmatprep.subr.bf16.mxu1 %v3868_v0  ;;  %v3821_v63 = vcombine.low %v743_v51, %v747_v52  ;;  %v3949_v0 = vcombine.low %v871_v54, %v875_v55  ;;  %v3942_v2 = vcombine.high %v863_v61, %v867_v62  ;;  %v827_v45 = vld [vmem:[#allocation7 + $0x438] sm:$0xff] }
 0x246   :  { %2507 = vmatprep.subr.bf16.mxu0 %v3996_v1  ;;  %v3814_v1 = vcombine.high %v735_v58, %v739_v59  ;;  %v819_v51 = vld [vmem:[#allocation7 + $0x3f8] sm:$0xff]  ;;  %v3901_v55 = vcombine.low %v823_v44, %v827_v45 }
 0x247   :  { %v943_v52 = vld [vmem:[#allocation7 + $0x7d8] sm:$0xff] }
 0x248   :  { %2465 = vmatpush2.bf16.msra.mxu1 %v3867_v6  ;;  %v859_v6 = vld [vmem:[#allocation7 + $0x538] sm:$0xff] }
 0x249   :  { %2508 = vmatpush2.bf16.msra.mxu0 %v3995_v7  ;;  %2466 = vmatprep.subr.bf16.mxu1 %v3860_v8  ;;  %v3813_v7 = vcombine.low %v735_v58, %v739_v59  ;;  %v3941_v8 = vcombine.low %v863_v61, %v867_v62  ;;  %v807_v58 = vld [vmem:[#allocation7 + $0x398] sm:$0xff] }
 0x24a   :  { %2509 = vmatprep.subr.bf16.mxu0 %v3988_v9  ;;  %v3806_v9 = vcombine.high %v727_v3, %v731_v4  ;;  %v811_v59 = vld [vmem:[#allocation7 + $0x3b8] sm:$0xff] }
 0x24b   :  { %v939_v61 = vld [vmem:[#allocation7 + $0x7b8] sm:$0xff] }
 0x24c   :  { %2467 = vmatpush2.bf16.msra.mxu1 %v3859_v21  ;;  %v3933_v21 = vcombine.low %v855_v5, %v859_v6 }
 0x24d   :  { %2510 = vmatpush2.bf16.msra.mxu0 %v3987_v22  ;;  %2468 = vmatprep.subr.bf16.mxu1 %v3852_v23  ;;  %v3798_v22 = vcombine.high %v719_v10, %v723_v11  ;;  %v3926_v23 = vcombine.high %v847_v19, %v851_v20  ;;  %v795_v10 = vld [vmem:[#allocation7 + $0x338] sm:$0xff] }
 0x24e   :  { %2511 = vmatprep.subr.bf16.mxu0 %v3980_v24  ;;  %v711_v24 = vld [vmem:[#allocation7 + $0x98] sm:$0xff] }
 0x24f   :  { %v3789_v36 = vcombine.low %v711_v24, %v715_v25  ;;  %v919_v11 = vld [vmem:[#allocation7 + $0x718] sm:$0xff] }
 0x250   :  { %2469 = vmatpush2.bf16.msra.mxu1 %v3851_v29  ;;  %v3925_v29 = vcombine.low %v847_v19, %v851_v20  ;;  %v923_v19 = vld [vmem:[#allocation7 + $0x738] sm:$0xff] }
 0x251   :  { %2512 = vmatpush2.bf16.msra.mxu0 %v3979_v30  ;;  %2470 = vmatprep.subr.bf16.mxu1 %v3844_v31  ;;  %v3790_v30 = vcombine.high %v711_v24, %v715_v25  ;;  %v3918_v31 = vcombine.high %v839_v26, %v843_v27  ;;  %v787_v24 = vld [vmem:[#allocation7 + $0x2f8] sm:$0xff] }
 0x252   :  { %2513 = vmatprep.subr.bf16.mxu0 %v3972_v32  ;;  %v703_v32 = vld [vmem:[#allocation7 + $0x58] sm:$0xff] }
 0x253   :  { %v3781_v46 = vcombine.low %v703_v32, %v707_v33  ;;  %v911_v25 = vld [vmem:[#allocation7 + $0x6d8] sm:$0xff] }
 0x254   :  { %2471 = vmatpush2.bf16.msra.mxu1 %v3843_v37  ;;  %v3917_v37 = vcombine.low %v839_v26, %v843_v27  ;;  %v915_v26 = vld [vmem:[#allocation7 + $0x6f8] sm:$0xff] }
 0x255   :  { %2514 = vmatpush2.bf16.msra.mxu0 %v3971_v38  ;;  %2472 = vmatprep.subr.bf16.mxu1 %v3836_v39  ;;  %v3782_v38 = vcombine.high %v703_v32, %v707_v33  ;;  %v3910_v39 = vcombine.high %v831_v34, %v835_v35  ;;  %v779_v32 = vld [vmem:[#allocation7 + $0x2b8] sm:$0xff] }
 0x256   :  { %2515 = vmatprep.subr.bf16.mxu0 %v3964_v40  ;;  %v695_v40 = vld [vmem:[#allocation7 + $0x18] sm:$0xff] }
 0x257   :  { %v3773_v54 = vcombine.low %v695_v40, %v699_v43  ;;  %v903_v33 = vld [vmem:[#allocation7 + $0x698] sm:$0xff] }
 0x258   :  { %2473 = vmatpush2.bf16.msra.mxu1 %v3835_v47  ;;  %v3909_v47 = vcombine.low %v831_v34, %v835_v35  ;;  %v907_v34 = vld [vmem:[#allocation7 + $0x6b8] sm:$0xff] }
 0x259   :  { %2516 = vmatpush2.bf16.msra.mxu0 %v3963_v48  ;;  %2528 = vmatprep.subr.bf16.mxu1 %v3830_v49  ;;  %v3774_v48 = vcombine.high %v695_v40, %v699_v43  ;;  %v3902_v49 = vcombine.high %v823_v44, %v827_v45  ;;  %v771_v40 = vld [vmem:[#allocation7 + $0x278] sm:$0xff] }
 0x25a   :  { %2571 = vmatprep.subr.bf16.mxu0 %v3958_v50  ;;  %v815_v50 = vld [vmem:[#allocation7 + $0x3d8] sm:$0xff] }
 0x25b   :  { %2475 = vmatmul.mubr.bf16.vlgmr.msra.gmra.mxu1 %v4679_v14  ;;  %v3893_v62 = vcombine.low %v815_v50, %v819_v51  ;;  %v895_v43 = vld [vmem:[#allocation7 + $0x658] sm:$0xff] }
 0x25c   :  { %2518 = vmatmul.mubr.bf16.vlgmr.msra.gmra.mxu0 %v4681_v18  ;;  %2529 = vmatpush1.bf16.msra.mxu1 %v3829_v53  ;;  %v947_v53 = vld [vmem:[#allocation7 + $0x7f8] sm:$0xff] }
 0x25d   :  { %2560 = vmatprep.mubr.bf16.mxu1 %v4675_v12  ;;  %2572 = vmatpush1.bf16.msra.mxu0 %v3957_v56  ;;  %v3934_v12 = vcombine.high %v855_v5, %v859_v6  ;;  %v3894_v56 = vcombine.high %v815_v50, %v819_v51  ;;  %v931_v5 = vld [vmem:[#allocation7 + $0x778] sm:$0xff]  ;;  %v3885_v6 = vcombine.low %v807_v58, %v811_v59 }
 0x25e   :  { %2603 = vmatprep.mubr.bf16.mxu0 %v4677_v13  ;;  %2530 = vmatprep.subr.bf16.mxu1 %v3822_v57  ;;  %v3805_v13 = vcombine.low %v727_v3, %v731_v4  ;;  %v4022_v57 = vcombine.high %v943_v52, %v947_v53  ;;  %v803_v3 = vld [vmem:[#allocation7 + $0x378] sm:$0xff] }
 0x25f   :  { %2573 = vmatprep.subr.bf16.mxu0 %v3950_v60  ;;  %v935_v60 = vld [vmem:[#allocation7 + $0x798] sm:$0xff] }
 0x260   :  { %2531 = vmatpush1.bf16.msra.mxu1 %v3821_v63  ;;  %v4021_v63 = vcombine.low %v943_v52, %v947_v53  ;;  %v927_v4 = vld [vmem:[#allocation7 + $0x758] sm:$0xff] }
 0x261   :  { %2574 = vmatpush1.bf16.msra.mxu0 %v3949_v0  ;;  %2532 = vmatprep.subr.bf16.mxu1 %v3814_v1  ;;  %v3886_v0 = vcombine.high %v807_v58, %v811_v59  ;;  %v4014_v1 = vcombine.high %v935_v60, %v939_v61  ;;  %v899_v44 = vld [vmem:[#allocation7 + $0x678] sm:$0xff] }
 0x262   :  { %2575 = vmatprep.subr.bf16.mxu0 %v3942_v2  ;;  %v799_v2 = vld [vmem:[#allocation7 + $0x358] sm:$0xff] }
 0x263   :  { %v3877_v20 = vcombine.low %v799_v2, %v803_v3  ;;  %v763_v50 = vld [vmem:[#allocation7 + $0x238] sm:$0xff] }
 0x264   :  { %2533 = vmatpush1.bf16.msra.mxu1 %v3813_v7  ;;  %v4013_v7 = vcombine.low %v935_v60, %v939_v61  ;;  %v887_v51 = vld [vmem:[#allocation7 + $0x618] sm:$0xff] }
 0x265   :  { %2576 = vmatpush1.bf16.msra.mxu0 %v3941_v8  ;;  %2534 = vmatprep.subr.bf16.mxu1 %v3806_v9  ;;  %v3878_v8 = vcombine.high %v799_v2, %v803_v3  ;;  %v4006_v9 = vcombine.high %v927_v4, %v931_v5  ;;  %v891_v52 = vld [vmem:[#allocation7 + $0x638] sm:$0xff]  ;;  %v4320_v2 = vld [vmem:[#allocation8 + $0x164] ss:$8 sps:$4 sm:$0xff]  }
 0x266   :  { %2577 = vmatprep.subr.bf16.mxu0 %v3934_v12  ;;  %v791_v12 = vld [vmem:[#allocation7 + $0x318] sm:$0xff]  ;;  %v3965_v58 = vcombine.low %v887_v51, %v891_v52 }
 0x267   :  { %v3869_v27 = vcombine.low %v791_v12, %v795_v10  ;;  %v4299_v59 = vld [vmem:[#allocation8 + $0x74] ss:$8 sps:$4 sm:$0xff]   ;;  %v4297_v61 = vld [vmem:[#allocation8 + $0x70] ss:$8 sps:$4 sm:$0xff]  }
 0x268   :  { %2535 = vmatpush1.bf16.msra.mxu1 %v3805_v13  ;;  %v4005_v13 = vcombine.low %v927_v4, %v931_v5  ;;  %v4314_v60 = vld [vmem:[#allocation8 + $0x174] ss:$8 sps:$4 sm:$0xff]   ;;  %v4300_v5 = vld [vmem:[#allocation8 + $0x60] ss:$8 sps:$4 sm:$0xff]  }
 0x269   :  { %2578 = vmatpush1.bf16.msra.mxu0 %v3933_v21  ;;  %2536 = vmatprep.subr.bf16.mxu1 %v3798_v22  ;;  %v3870_v21 = vcombine.high %v791_v12, %v795_v10  ;;  %v3998_v22 = vcombine.high %v919_v11, %v923_v19  ;;  %v4326_v10 = vld [vmem:[#allocation8 + $0x154] ss:$8 sps:$4 sm:$0xff]  }
 0x26a   :  { %2579 = vmatprep.subr.bf16.mxu0 %v3926_v23  ;;  %v783_v23 = vld [vmem:[#allocation7 + $0x2d8] sm:$0xff] }
 0x26b   :  { %v3861_v35 = vcombine.low %v783_v23, %v787_v24 }
 0x26c   :  { %2537 = vmatpush1.bf16.msra.mxu1 %v3797_v28  ;;  %v3997_v28 = vcombine.low %v919_v11, %v923_v19  ;;  %v4303_v19 = vld [vmem:[#allocation8 + $0x50] ss:$8 sps:$4 sm:$0xff]  }
 0x26d   :  { %2580 = vmatpush1.bf16.msra.mxu0 %v3925_v29  ;;  %2538 = vmatprep.subr.bf16.mxu1 %v3790_v30  ;;  %v3862_v29 = vcombine.high %v783_v23, %v787_v24  ;;  %v3990_v30 = vcombine.high %v911_v25, %v915_v26  ;;  %v4332_v23 = vld [vmem:[#allocation8 + $0x144] ss:$8 sps:$4 sm:$0xff]  }
 0x26e   :  { %2581 = vmatprep.subr.bf16.mxu0 %v3918_v31  ;;  %v775_v31 = vld [vmem:[#allocation7 + $0x298] sm:$0xff] }
 0x26f   :  { %v3853_v45 = vcombine.low %v775_v31, %v779_v32 }
 0x270   :  { %2539 = vmatpush1.bf16.msra.mxu1 %v3789_v36  ;;  %v3989_v36 = vcombine.low %v911_v25, %v915_v26  ;;  %v4306_v26 = vld [vmem:[#allocation8 + $0x40] ss:$8 sps:$4 sm:$0xff]  }
 0x271   :  { %2582 = vmatpush1.bf16.msra.mxu0 %v3917_v37  ;;  %2540 = vmatprep.subr.bf16.mxu1 %v3782_v38  ;;  %v3854_v37 = vcombine.high %v775_v31, %v779_v32  ;;  %v3982_v38 = vcombine.high %v903_v33, %v907_v34  ;;  %v4338_v31 = vld [vmem:[#allocation8 + $0x134] ss:$8 sps:$4 sm:$0xff]  }
 0x272   :  { %2583 = vmatprep.subr.bf16.mxu0 %v3910_v39  ;;  %v767_v39 = vld [vmem:[#allocation7 + $0x258] sm:$0xff] }
 0x273   :  { %v3845_v53 = vcombine.low %v767_v39, %v771_v40 }
 0x274   :  { %2541 = vmatpush1.bf16.msra.mxu1 %v3781_v46  ;;  %v3981_v46 = vcombine.low %v903_v33, %v907_v34  ;;  %v4309_v33 = vld [vmem:[#allocation8 + $0x30] ss:$8 sps:$4 sm:$0xff]   ;;  %v4317_v34 = vld [vmem:[#allocation8 + $0x24] ss:$8 sps:$4 sm:$0xff]  }
 0x275   :  { %2584 = vmatpush1.bf16.msra.mxu0 %v3909_v47  ;;  %2542 = vmatprep.subr.bf16.mxu1 %v3774_v48  ;;  %v3846_v47 = vcombine.high %v767_v39, %v771_v40  ;;  %v3974_v48 = vcombine.high %v895_v43, %v899_v44  ;;  %v4342_v39 = vld [vmem:[#allocation8 + $0x120] ss:$8 sps:$4 sm:$0xff]   ;;  %v4350_v40 = vld [vmem:[#allocation8 + $0x114] ss:$8 sps:$4 sm:$0xff]  }
 0x276   :  { %2585 = vmatprep.subr.bf16.mxu0 %v3902_v49  ;;  %v759_v49 = vld [vmem:[#allocation7 + $0x218] sm:$0xff] }
 0x278   :  { %2543 = vmatpush1.bf16.msra.mxu1 %v3773_v54  ;;  %v3973_v54 = vcombine.low %v895_v43, %v899_v44  ;;  %v4321_v43 = vld [vmem:[#allocation8 + $0x10] ss:$8 sps:$4 sm:$0xff]   ;;  %v4329_v44 = vld [vmem:[#allocation8 + $0x4] ss:$8 sps:$4 sm:$0xff]  }
 0x279   :  { %2586 = vmatpush1.bf16.msra.mxu0 %v3901_v55  ;;  %2544 = vmatprep.subr.bf16.mxu1 %v3894_v56  ;;  %v3838_v55 = vcombine.high %v759_v49, %v763_v50  ;;  %v3966_v56 = vcombine.high %v887_v51, %v891_v52  ;;  %v4333_v51 = vld [vmem:[#allocation8 + $0xf0] ss:$8 sps:$4 sm:$0xff]   ;;  %v4341_v52 = vld [vmem:[#allocation8 + $0xe4] ss:$8 sps:$4 sm:$0xff]  }
 0x27a   :  { %2587 = vmatprep.subr.bf16.mxu0 %v4022_v57  ;;  %v3837_v57 = vcombine.low %v759_v49, %v763_v50  ;;  %v4354_v49 = vld [vmem:[#allocation8 + $0x100] ss:$8 sps:$4 sm:$0xff]   ;;  %v4362_v50 = vld [vmem:[#allocation8 + $0x1f4] ss:$8 sps:$4 sm:$0xff]  }
 0x27c   :  { %2545 = vmatpush2.bf16.msra.mxu1 %v3893_v62  ;;  %v4700_v62 = vld [vmem:[%s4757_s6] sm:$0xff] }
 0x27d   :  { %2588 = vmatpush2.bf16.msra.mxu0 %v4021_v63  ;;  %2546 = vmatprep.subr.bf16.mxu1 %v3886_v0  ;;  %v4302_v63 = vld [vmem:[#allocation8 + $0x64] ss:$8 sps:$4 sm:$0xff]   ;;  %v4312_v0 = vld [vmem:[#allocation8 + $0x170] ss:$8 sps:$4 sm:$0xff]  }
 0x27e   :  { %2589 = vmatprep.subr.bf16.mxu0 %v4014_v1  ;;  %v957_v1 = vrot.slane %v4700_v62, %v4654_v16 }
 0x280   :  { %2547 = vmatpush2.bf16.msra.mxu1 %v3885_v6 }
 0x281   :  { %2590 = vmatpush2.bf16.msra.mxu0 %v4013_v7  ;;  %2548 = vmatprep.subr.bf16.mxu1 %v3878_v8  ;;  %v4305_v8 = vld [vmem:[#allocation8 + $0x54] ss:$8 sps:$4 sm:$0xff]  }
 0x282   :  { %2591 = vmatprep.subr.bf16.mxu0 %v4006_v9  ;;  %v4318_v9 = vld [vmem:[#allocation8 + $0x160] ss:$8 sps:$4 sm:$0xff]  }
 0x284   :  { %2549 = vmatpush2.bf16.msra.mxu1 %v3877_v20 }
 0x285   :  { %2592 = vmatpush2.bf16.msra.mxu0 %v4005_v13  ;;  %2550 = vmatprep.subr.bf16.mxu1 %v3870_v21  ;;  %v4324_v13 = vld [vmem:[#allocation8 + $0x150] ss:$8 sps:$4 sm:$0xff]  }
 0x286   :  { %2593 = vmatprep.subr.bf16.mxu0 %v3998_v22 }
 0x288   :  { %2551 = vmatpush2.bf16.msra.mxu1 %v3869_v27  ;;  %v4311_v27 = vld [vmem:[#allocation8 + $0x34] ss:$8 sps:$4 sm:$0xff]  }
 0x289   :  { %2594 = vmatpush2.bf16.msra.mxu0 %v3997_v28  ;;  %2552 = vmatprep.subr.bf16.mxu1 %v3862_v29  ;;  %v4330_v28 = vld [vmem:[#allocation8 + $0x140] ss:$8 sps:$4 sm:$0xff]  }
 0x28a   :  { %2595 = vmatprep.subr.bf16.mxu0 %v3990_v30 }
 0x28c   :  { %2553 = vmatpush2.bf16.msra.mxu1 %v3861_v35  ;;  %v4336_v35 = vld [vmem:[#allocation8 + $0x130] ss:$8 sps:$4 sm:$0xff]  }
 0x28d   :  { %2596 = vmatpush2.bf16.msra.mxu0 %v3989_v36  ;;  %2554 = vmatprep.subr.bf16.mxu1 %v3854_v37  ;;  %v4344_v36 = vld [vmem:[#allocation8 + $0x124] ss:$8 sps:$4 sm:$0xff]   ;;  %v4315_v37 = vld [vmem:[#allocation8 + $0x20] ss:$8 sps:$4 sm:$0xff]  }
 0x28e   :  { %2597 = vmatprep.subr.bf16.mxu0 %v3982_v38  ;;  %v4323_v38 = vld [vmem:[#allocation8 + $0x14] ss:$8 sps:$4 sm:$0xff]  }
 0x290   :  { %2555 = vmatpush2.bf16.msra.mxu1 %v3853_v45  ;;  %v4348_v45 = vld [vmem:[#allocation8 + $0x110] ss:$8 sps:$4 sm:$0xff]  }
 0x291   :  { %2598 = vmatpush2.bf16.msra.mxu0 %v3981_v46  ;;  %2556 = vmatprep.subr.bf16.mxu1 %v3846_v47  ;;  %v4356_v46 = vld [vmem:[#allocation8 + $0x104] ss:$8 sps:$4 sm:$0xff]   ;;  %v4327_v47 = vld [vmem:[#allocation8] ss:$8 sps:$4 sm:$0xff]  }
 0x292   :  { %2599 = vmatprep.subr.bf16.mxu0 %v3974_v48  ;;  %v4335_v48 = vld [vmem:[#allocation8 + $0xf4] ss:$8 sps:$4 sm:$0xff]  }
 0x294   :  { %2557 = vmatpush2.bf16.msra.mxu1 %v3845_v53  ;;  %v4360_v53 = vld [vmem:[#allocation8 + $0x1f0] ss:$8 sps:$4 sm:$0xff]  }
 0x295   :  { %2600 = vmatpush2.bf16.msra.mxu0 %v3973_v54  ;;  %2558 = vmatprep.subr.bf16.mxu1 %v3838_v55  ;;  %v4368_v54 = vld [vmem:[#allocation8 + $0x1e4] ss:$8 sps:$4 sm:$0xff]   ;;  %v4339_v55 = vld [vmem:[#allocation8 + $0xe0] ss:$8 sps:$4 sm:$0xff]  }
 0x296   :  { %2601 = vmatprep.subr.bf16.mxu0 %v3966_v56  ;;  %v4347_v56 = vld [vmem:[#allocation8 + $0xd4] ss:$8 sps:$4 sm:$0xff]  }
 0x298   :  { %2559 = vmatpush2.bf16.msra.mxu1 %v3837_v57  ;;  %v4366_v57 = vld [vmem:[#allocation8 + $0x1e0] ss:$8 sps:$4 sm:$0xff]  }
 0x299   :  { %2602 = vmatpush2.bf16.msra.mxu0 %v3965_v58  ;;  %3514 = vmatprep.subr.bf16.mxu1 %v4299_v59  ;;  %v4374_v58 = vld [vmem:[#allocation8 + $0x1d4] ss:$8 sps:$4 sm:$0xff]   ;;  %v4345_v59 = vld [vmem:[#allocation8 + $0xd0] ss:$8 sps:$4 sm:$0xff]  }
 0x29a   :  { %3557 = vmatprep.subr.bf16.mxu0 %v4314_v60  ;;  %v4353_v60 = vld [vmem:[#allocation8 + $0xc4] ss:$8 sps:$4 sm:$0xff]  }
 0x29b   :  { %2561 = vmatmul.mubr.bf16.vlgmr.msra.gmra.mxu1 %v4679_v14  ;;  %v4705_v3 = vpop.f32.mrf.mxu1  ;;  %v4707_v4 = vpop.f32.mrf.mxu0 }
 0x29c   :  { %2604 = vmatmul.mubr.bf16.vlgmr.msra.gmra.mxu0 %v4681_v18  ;;  %3515 = vmatpush1.bf16.msra.mxu1 %v4297_v61  ;;  %v4308_v18 = vld [vmem:[#allocation8 + $0x44] ss:$8 sps:$4 sm:$0xff]   ;;  %v4372_v61 = vld [vmem:[#allocation8 + $0x1d0] ss:$8 sps:$4 sm:$0xff]  }
 0x29d   :  { %v2306_v6 = vpop.f32.mrf.mxu1  ;;  %v2349_v7 = vpop.f32.mrf.mxu0  ;;  %3516 = vmatprep.subr.bf16.mxu1 %v4302_v63  ;;  %3558 = vmatpush1.bf16.msra.mxu0 %v4312_v0  ;;  %v4380_v63 = vld [vmem:[#allocation8 + $0x1c4] ss:$8 sps:$4 sm:$0xff]   ;;  %v4351_v0 = vld [vmem:[#allocation8 + $0xc0] ss:$8 sps:$4 sm:$0xff]  }
 0x29e   :  { %v2307_v12 = vadd.f32 %v2306_v6, %v957_v1  ;;  %3559 = vmatprep.subr.bf16.mxu0 %v4320_v2  ;;  %v4378_v2 = vld [vmem:[#allocation8 + $0x1c0] ss:$8 sps:$4 sm:$0xff]   ;;  %v4357_v6 = vld [vmem:[#allocation8 + $0xb0] ss:$8 sps:$4 sm:$0xff]  }
 0x29f   :  { %v4710_v11 = vpop.f32.mrf.mxu1  ;;  %v4712_v14 = vpop.f32.mrf.mxu0 }
 0x2a0   :  { %3517 = vmatpush1.bf16.msra.mxu1 %v4300_v5  ;;  %v2350_v21 = vadd.f32 %v2349_v7, %v2307_v12  ;;  %v4383_v5 = vld [vmem:[#allocation8 + $0x1b4] ss:$8 sps:$4 sm:$0xff]   ;;  %v4365_v7 = vld [vmem:[#allocation8 + $0xa4] ss:$8 sps:$4 sm:$0xff]   ;;  %v953_v12 = vrot.slane %v4700_v62, %v4657_v17 }
 0x2a1   :  { %v2310_v20 = vpop.f32.mrf.mxu1  ;;  %3518 = vmatprep.subr.bf16.mxu1 %v4305_v8  ;;  %3560 = vmatpush1.bf16.msra.mxu0 %v4318_v9  ;;  %v2353_v24 = vpop.f32.mrf.mxu0  ;;  %v4381_v8 = vld [vmem:[#allocation8 + $0x1b0] ss:$8 sps:$4 sm:$0xff]   ;;  %v4386_v9 = vld [vmem:[#allocation8 + $0x1a4] ss:$8 sps:$4 sm:$0xff]  }
 0x2a2   :  { %v2311_v22 = vadd.f32 %v2310_v20, %v957_v1  ;;  %3561 = vmatprep.subr.bf16.mxu0 %v4326_v10  ;;  %v2615_v29 = vmax.f32 %v2350_v21, 0.0  ;;  %v4359_v1 = vld [vmem:[#allocation8 + $0xb4] ss:$8 sps:$4 sm:$0xff]   ;;  %v4363_v10 = vld [vmem:[#allocation8 + $0xa0] ss:$8 sps:$4 sm:$0xff]   ;;  %v2305_v21 = vadd.f32 %v4705_v3, %v953_v12 }
 0x2a3   :  { %v4371_v20 = vld [vmem:[#allocation8 + $0x94] ss:$8 sps:$4 sm:$0xff]  }
 0x2a4   :  { %v2354_v25 = vadd.f32 %v2353_v24, %v2311_v22  ;;  %3519 = vmatpush1.bf16.msra.mxu1 %v4303_v19  ;;  %v2309_v19 = vadd.f32 %v4710_v11, %v953_v12  ;;  %v4369_v22 = vld [vmem:[#allocation8 + $0x90] ss:$8 sps:$4 sm:$0xff]   ;;  %v4377_v24 = vld [vmem:[#allocation8 + $0x84] ss:$8 sps:$4 sm:$0xff]   ;;  %v2348_v11 = vadd.f32 %v4707_v4, %v2305_v21  ;;  %v4443_v3 = vld [vmem:[#allocation8 + $0x374] ss:$8 sps:$4 sm:$0xff]   ;;  %v965_v4 = vrot.slane %v4700_v62, %v268_v41 }
 0x2a5   :  { %3520 = vmatprep.subr.bf16.mxu1 %v4308_v18  ;;  %3562 = vmatpush1.bf16.msra.mxu0 %v4324_v13  ;;  %v4384_v18 = vld [vmem:[#allocation8 + $0x1a0] ss:$8 sps:$4 sm:$0xff]   ;;  %v4389_v13 = vld [vmem:[#allocation8 + $0x194] ss:$8 sps:$4 sm:$0xff]   ;;  %v4399_v41 = vld [vmem:[#allocation8 + $0x250] ss:$8 sps:$4 sm:$0xff]  }
 0x2a6   :  { %v2623_v30 = vmax.f32 %v2354_v25, 0.0  ;;  %3563 = vmatprep.subr.bf16.mxu0 %v4332_v23  ;;  %v2352_v23 = vadd.f32 %v4712_v14, %v2309_v19  ;;  %v4387_v25 = vld [vmem:[#allocation8 + $0x190] ss:$8 sps:$4 sm:$0xff]   ;;  %v4416_v19 = vld [vmem:[#allocation8 + $0x204] ss:$8 sps:$4 sm:$0xff]  }
 0x2a7   :  { %v4393_v14 = vld [vmem:[#allocation8 + $0x270] ss:$8 sps:$4 sm:$0xff]   ;;  %v4419_v21 = vld [vmem:[#allocation8 + $0x2f4] ss:$8 sps:$4 sm:$0xff]  }
 0x2a8   :  { %v4176_v32 = vpack.c.bf16 %v2623_v30, %v2615_v29  ;;  %3521 = vmatpush1.bf16.msra.mxu1 %v4306_v26  ;;  %v4392_v26 = vld [vmem:[#allocation8 + $0x184] ss:$8 sps:$4 sm:$0xff]   ;;  %v4390_v29 = vld [vmem:[#allocation8 + $0x180] ss:$8 sps:$4 sm:$0xff]   ;;  %v4395_v30 = vld [vmem:[#allocation8 + $0x274] ss:$8 sps:$4 sm:$0xff]  }
 0x2a9   :  { %3522 = vmatprep.subr.bf16.mxu1 %v4311_v27  ;;  %3564 = vmatpush1.bf16.msra.mxu0 %v4330_v28  ;;  %v4375_v27 = vld [vmem:[#allocation8 + $0x80] ss:$8 sps:$4 sm:$0xff]   ;;  %v2622_v28 = vmax.f32 %v2352_v23, 0.0  ;;  %v4411_v12 = vld [vmem:[#allocation8 + $0x210] ss:$8 sps:$4 sm:$0xff]  }
 0x2aa   :  { %3546 = vmatprep.mubr.bf16.mxu1 %v4176_v32  ;;  %3565 = vmatprep.subr.bf16.mxu0 %v4338_v31  ;;  %v2614_v31 = vmax.f32 %v2348_v11, 0.0  ;;  %v4417_v23 = vld [vmem:[#allocation8 + $0x2f0] ss:$8 sps:$4 sm:$0xff]   ;;  %v4420_v11 = vld [vmem:[#allocation8 + $0x2e0] ss:$8 sps:$4 sm:$0xff]  }
 0x2ac   :  { %3523 = vmatpush1.bf16.msra.mxu1 %v4309_v33  ;;  %v4175_v32 = vpack.c.bf16 %v2622_v28, %v2614_v31  ;;  %v4398_v33 = vld [vmem:[#allocation8 + $0x264] ss:$8 sps:$4 sm:$0xff]   ;;  %v4425_v28 = vld [vmem:[#allocation8 + $0x2d4] ss:$8 sps:$4 sm:$0xff]  }
 0x2ad   :  { %3524 = vmatprep.subr.bf16.mxu1 %v4317_v34  ;;  %3566 = vmatpush1.bf16.msra.mxu0 %v4336_v35  ;;  %v961_v34 = vrot.slane %v4700_v62, %v264_v42  ;;  %v4428_v31 = vld [vmem:[#allocation8 + $0x2c4] ss:$8 sps:$4 sm:$0xff]  }
 0x2ae   :  { %3567 = vmatprep.subr.bf16.mxu0 %v4344_v36 }
 0x2b0   :  { %3525 = vmatpush1.bf16.msra.mxu1 %v4315_v37  ;;  %v4396_v37 = vld [vmem:[#allocation8 + $0x260] ss:$8 sps:$4 sm:$0xff]  }
 0x2b1   :  { %3526 = vmatprep.subr.bf16.mxu1 %v4323_v38  ;;  %3568 = vmatpush1.bf16.msra.mxu0 %v4342_v39 }
 0x2b2   :  { %3569 = vmatprep.subr.bf16.mxu0 %v4350_v40  ;;  %v4401_v40 = vld [vmem:[#allocation8 + $0x254] ss:$8 sps:$4 sm:$0xff]  }
 0x2b4   :  { %3527 = vmatpush1.bf16.msra.mxu1 %v4321_v43 }
 0x2b5   :  { %3528 = vmatprep.subr.bf16.mxu1 %v4329_v44  ;;  %3570 = vmatpush1.bf16.msra.mxu0 %v4348_v45 }
 0x2b6   :  { %3571 = vmatprep.subr.bf16.mxu0 %v4356_v46 }
 0x2b8   :  { %3529 = vmatpush1.bf16.msra.mxu1 %v4327_v47 }
 0x2b9   :  { %3530 = vmatprep.subr.bf16.mxu1 %v4335_v48  ;;  %3572 = vmatpush1.bf16.msra.mxu0 %v4354_v49  ;;  %v4404_v49 = vld [vmem:[#allocation8 + $0x244] ss:$8 sps:$4 sm:$0xff]  }
 0x2ba   :  { %3573 = vmatprep.subr.bf16.mxu0 %v4362_v50 }
 0x2bc   :  { %3531 = vmatpush2.bf16.msra.mxu1 %v4333_v51 }
 0x2bd   :  { %3532 = vmatprep.subr.bf16.mxu1 %v4341_v52  ;;  %3574 = vmatpush2.bf16.msra.mxu0 %v4360_v53 }
 0x2be   :  { %3575 = vmatprep.subr.bf16.mxu0 %v4368_v54 }
 0x2c0   :  { %3533 = vmatpush2.bf16.msra.mxu1 %v4339_v55  ;;  %v4402_v55 = vld [vmem:[#allocation8 + $0x240] ss:$8 sps:$4 sm:$0xff]  }
 0x2c1   :  { %3534 = vmatprep.subr.bf16.mxu1 %v4347_v56  ;;  %3576 = vmatpush2.bf16.msra.mxu0 %v4366_v57  ;;  %v4407_v57 = vld [vmem:[#allocation8 + $0x234] ss:$8 sps:$4 sm:$0xff]  }
 0x2c2   :  { %3577 = vmatprep.subr.bf16.mxu0 %v4374_v58 }
 0x2c4   :  { %3535 = vmatpush2.bf16.msra.mxu1 %v4345_v59 }
 0x2c5   :  { %3536 = vmatprep.subr.bf16.mxu1 %v4353_v60  ;;  %3578 = vmatpush2.bf16.msra.mxu0 %v4372_v61 }
 0x2c6   :  { %3579 = vmatprep.subr.bf16.mxu0 %v4380_v63  ;;  %v4405_v63 = vld [vmem:[#allocation8 + $0x230] ss:$8 sps:$4 sm:$0xff]  }
 0x2c8   :  { %3537 = vmatpush2.bf16.msra.mxu1 %v4351_v0  ;;  %v4441_v0 = vld [vmem:[#allocation8 + $0x370] ss:$8 sps:$4 sm:$0xff]  }
 0x2c9   :  { %3538 = vmatprep.subr.bf16.mxu1 %v4359_v1  ;;  %3580 = vmatpush2.bf16.msra.mxu0 %v4378_v2  ;;  %v4410_v2 = vld [vmem:[#allocation8 + $0x224] ss:$8 sps:$4 sm:$0xff]  }
 0x2ca   :  { %3581 = vmatprep.subr.bf16.mxu0 %v4383_v5  ;;  %v4446_v5 = vld [vmem:[#allocation8 + $0x364] ss:$8 sps:$4 sm:$0xff]  }
 0x2cc   :  { %3539 = vmatpush2.bf16.msra.mxu1 %v4357_v6  ;;  %v4408_v6 = vld [vmem:[#allocation8 + $0x220] ss:$8 sps:$4 sm:$0xff]  }
 0x2cd   :  { %3540 = vmatprep.subr.bf16.mxu1 %v4365_v7  ;;  %3582 = vmatpush2.bf16.msra.mxu0 %v4381_v8  ;;  %v4444_v7 = vld [vmem:[#allocation8 + $0x360] ss:$8 sps:$4 sm:$0xff]   ;;  %v4413_v8 = vld [vmem:[#allocation8 + $0x214] ss:$8 sps:$4 sm:$0xff]  }
 0x2ce   :  { %3583 = vmatprep.subr.bf16.mxu0 %v4386_v9  ;;  %v4449_v9 = vld [vmem:[#allocation8 + $0x354] ss:$8 sps:$4 sm:$0xff]  }
 0x2d0   :  { %3541 = vmatpush2.bf16.msra.mxu1 %v4363_v10  ;;  %v4447_v10 = vld [vmem:[#allocation8 + $0x350] ss:$8 sps:$4 sm:$0xff]  }
 0x2d1   :  { %3542 = vmatprep.subr.bf16.mxu1 %v4371_v20  ;;  %3584 = vmatpush2.bf16.msra.mxu0 %v4384_v18  ;;  %v4452_v20 = vld [vmem:[#allocation8 + $0x344] ss:$8 sps:$4 sm:$0xff]   ;;  %v4414_v18 = vld [vmem:[#allocation8 + $0x200] ss:$8 sps:$4 sm:$0xff]  }
 0x2d2   :  { %3585 = vmatprep.subr.bf16.mxu0 %v4389_v13  ;;  %v4450_v13 = vld [vmem:[#allocation8 + $0x340] ss:$8 sps:$4 sm:$0xff]  }
 0x2d4   :  { %3543 = vmatpush2.bf16.msra.mxu1 %v4369_v22  ;;  %v4455_v22 = vld [vmem:[#allocation8 + $0x334] ss:$8 sps:$4 sm:$0xff]  }
 0x2d5   :  { %3544 = vmatprep.subr.bf16.mxu1 %v4377_v24  ;;  %3586 = vmatpush2.bf16.msra.mxu0 %v4387_v25  ;;  %v4453_v24 = vld [vmem:[#allocation8 + $0x330] ss:$8 sps:$4 sm:$0xff]   ;;  %v4422_v25 = vld [vmem:[#allocation8 + $0x2e4] ss:$8 sps:$4 sm:$0xff]  }
 0x2d6   :  { %3587 = vmatprep.subr.bf16.mxu0 %v4392_v26  ;;  %v4458_v26 = vld [vmem:[#allocation8 + $0x324] ss:$8 sps:$4 sm:$0xff]  }
 0x2d8   :  { %3545 = vmatpush2.bf16.msra.mxu1 %v4375_v27  ;;  %v4456_v27 = vld [vmem:[#allocation8 + $0x320] ss:$8 sps:$4 sm:$0xff]  }
 0x2d9   :  { %3588 = vmatpush2.bf16.msra.mxu0 %v4390_v29  ;;  %3600 = vmatprep.subr.bf16.mxu1 %v4395_v30  ;;  %v4461_v29 = vld [vmem:[#allocation8 + $0x314] ss:$8 sps:$4 sm:$0xff]   ;;  %v4423_v30 = vld [vmem:[#allocation8 + $0x2d0] ss:$8 sps:$4 sm:$0xff]  }
 0x2da   :  { %3643 = vmatprep.subr.bf16.mxu0 %v4443_v3  ;;  %v4459_v3 = vld [vmem:[#allocation8 + $0x310] ss:$8 sps:$4 sm:$0xff]  }
 0x2db   :  { %v2390_v35 = vpop.f32.mrf.mxu1  ;;  %v2433_v36 = vpop.f32.mrf.mxu0  ;;  %3547 = vmatmul.mubr.bf16.vlgmr.msra.gmra.mxu1 %v4175_v32  ;;  %v4426_v32 = vld [vmem:[#allocation8 + $0x2c0] ss:$8 sps:$4 sm:$0xff]  }
 0x2dc   :  { %3601 = vmatpush1.bf16.msra.mxu1 %v4393_v14  ;;  %v2391_v44 = vadd.f32 %v2390_v35, %v961_v34  ;;  %v4464_v14 = vld [vmem:[#allocation8 + $0x304] ss:$8 sps:$4 sm:$0xff]   ;;  %v4429_v35 = vld [vmem:[#allocation8 + $0x2b0] ss:$8 sps:$4 sm:$0xff]  }
 0x2dd   :  { %v2392_v38 = vpop.f32.mrf.mxu1  ;;  %v2435_v39 = vpop.f32.mrf.mxu0  ;;  %3602 = vmatprep.subr.bf16.mxu1 %v4398_v33  ;;  %v4462_v33 = vld [vmem:[#allocation8 + $0x300] ss:$8 sps:$4 sm:$0xff]  }
 0x2de   :  { %v2393_v43 = vadd.f32 %v2392_v38, %v965_v4  ;;  %v2434_v52 = vadd.f32 %v2433_v36, %v2391_v44  ;;  %v4465_v36 = vld [vmem:[#allocation8 + $0x3f0] ss:$8 sps:$4 sm:$0xff]   ;;  %v4470_v38 = vld [vmem:[#allocation8 + $0x3e4] ss:$8 sps:$4 sm:$0xff]   ;;  %v4473_v44 = vld [vmem:[#allocation8 + $0x3d4] ss:$8 sps:$4 sm:$0xff]  }
 0x2df   :  { %v2394_v45 = vpop.f32.mrf.mxu1  ;;  %v2437_v46 = vpop.f32.mrf.mxu0 }
 0x2e0   :  { %v2395_v47 = vadd.f32 %v2394_v45, %v961_v34  ;;  %3603 = vmatpush1.bf16.msra.mxu1 %v4396_v37  ;;  %v2436_v42 = vadd.f32 %v2435_v39, %v2393_v43  ;;  %v2616_v60 = vmax.f32 %v2434_v52, 0.0  ;;  %v4467_v34 = vld [vmem:[#allocation8 + $0x3f4] ss:$8 sps:$4 sm:$0xff]   ;;  %v4434_v37 = vld [vmem:[#allocation8 + $0x2a4] ss:$8 sps:$4 sm:$0xff]  }
 0x2e1   :  { %v2396_v48 = vpop.f32.mrf.mxu1  ;;  %3604 = vmatprep.subr.bf16.mxu1 %v4401_v40  ;;  %v2439_v53 = vpop.f32.mrf.mxu0  ;;  %v4432_v39 = vld [vmem:[#allocation8 + $0x2a0] ss:$8 sps:$4 sm:$0xff]   ;;  %v4437_v43 = vld [vmem:[#allocation8 + $0x294] ss:$8 sps:$4 sm:$0xff]   ;;  %v4435_v45 = vld [vmem:[#allocation8 + $0x290] ss:$8 sps:$4 sm:$0xff]  }
 0x2e2   :  { %v2438_v50 = vadd.f32 %v2437_v46, %v2395_v47  ;;  %v2397_v51 = vadd.f32 %v2396_v48, %v965_v4  ;;  %v2617_v58 = vmax.f32 %v2436_v42, 0.0  ;;  %v4431_v4 = vld [vmem:[#allocation8 + $0x2b4] ss:$8 sps:$4 sm:$0xff]   ;;  %v4468_v40 = vld [vmem:[#allocation8 + $0x3e0] ss:$8 sps:$4 sm:$0xff]  }
 0x2e3   :  { %v4471_v46 = vld [vmem:[#allocation8 + $0x3d0] ss:$8 sps:$4 sm:$0xff]   ;;  %v4440_v47 = vld [vmem:[#allocation8 + $0x284] ss:$8 sps:$4 sm:$0xff]   ;;  %v4438_v48 = vld [vmem:[#allocation8 + $0x280] ss:$8 sps:$4 sm:$0xff]  }
 0x2e4   :  { %v2440_v54 = vadd.f32 %v2439_v53, %v2397_v51  ;;  %3605 = vmatpush1.bf16.msra.mxu1 %v4399_v41  ;;  %v2624_v56 = vmax.f32 %v2438_v50, 0.0  ;;  %v4476_v41 = vld [vmem:[#allocation8 + $0x3c4] ss:$8 sps:$4 sm:$0xff]   ;;  %v4479_v42 = vld [vmem:[#allocation8 + $0x3b4] ss:$8 sps:$4 sm:$0xff]   ;;  %v972_v50 = vsub.s32 5, %v4651_v15 }
 0x2e5   :  { %3606 = vmatprep.subr.bf16.mxu1 %v4404_v49  ;;  %v4474_v49 = vld [vmem:[#allocation8 + $0x3c0] ss:$8 sps:$4 sm:$0xff]   ;;  %v968_v51 = vsub.s32 4, %v4651_v15  ;;  %v4477_v52 = vld [vmem:[#allocation8 + $0x3b0] ss:$8 sps:$4 sm:$0xff]  }
 0x2e6   :  { %v2625_v59 = vmax.f32 %v2440_v54, 0.0  ;;  %v4177_v1 = vpack.c.bf16 %v2624_v56, %v2616_v60  ;;  %v4482_v53 = vld [vmem:[#allocation8 + $0x3a4] ss:$8 sps:$4 sm:$0xff]   ;;  %v973_v54 = vrot.slane %v4700_v62, %v972_v50  ;;  %v4485_v60 = vld [vmem:[#allocation8 + $0x394] ss:$8 sps:$4 sm:$0xff]  }
 0x2e8   :  { %v4178_v61 = vpack.c.bf16 %v2625_v59, %v2617_v58  ;;  %3607 = vmatpush1.bf16.msra.mxu1 %v4402_v55  ;;  %v969_v55 = vrot.slane %v4700_v62, %v968_v51  ;;  %v4480_v58 = vld [vmem:[#allocation8 + $0x3a0] ss:$8 sps:$4 sm:$0xff]  }
 0x2e9   :  { %3608 = vmatprep.subr.bf16.mxu1 %v4407_v57  ;;  %v2822_v51 = vld [vmem:[%s4759_s8] sm:$0x3] }
 0x2ea   :  { %3589 = vmatprep.mubr.bf16.mxu0 %v4178_v61 }
 0x2eb   :  { %3590 = vmatmul.mubr.bf16.vlgmr.msra.gmra.mxu0 %v4177_v1 }
 0x2ec   :  { %3609 = vmatpush1.bf16.msra.mxu1 %v4405_v63  ;;  %3644 = vmatpush1.bf16.msra.mxu0 %v4441_v0 }
 0x2ed   :  { %3610 = vmatprep.subr.bf16.mxu1 %v4410_v2  ;;  %3645 = vmatprep.subr.bf16.mxu0 %v4446_v5 }
 0x2f0   :  { %3611 = vmatpush1.bf16.msra.mxu1 %v4408_v6  ;;  %3646 = vmatpush1.bf16.msra.mxu0 %v4444_v7  ;;  %v4483_v6 = vld [vmem:[#allocation8 + $0x390] ss:$8 sps:$4 sm:$0xff]  }
 0x2f1   :  { %3612 = vmatprep.subr.bf16.mxu1 %v4413_v8  ;;  %3647 = vmatprep.subr.bf16.mxu0 %v4449_v9  ;;  %v4488_v8 = vld [vmem:[#allocation8 + $0x384] ss:$8 sps:$4 sm:$0xff]  }
 0x2f4   :  { %3613 = vmatpush1.bf16.msra.mxu1 %v4411_v12  ;;  %3648 = vmatpush1.bf16.msra.mxu0 %v4447_v10 }
 0x2f5   :  { %3614 = vmatprep.subr.bf16.mxu1 %v4416_v19  ;;  %3649 = vmatprep.subr.bf16.mxu0 %v4452_v20 }
 0x2f8   :  { %3615 = vmatpush1.bf16.msra.mxu1 %v4414_v18  ;;  %3650 = vmatpush1.bf16.msra.mxu0 %v4450_v13  ;;  %v4486_v13 = vld [vmem:[#allocation8 + $0x380] ss:$8 sps:$4 sm:$0xff]  }
 0x2f9   :  { %3616 = vmatprep.subr.bf16.mxu1 %v4419_v21  ;;  %3651 = vmatprep.subr.bf16.mxu0 %v4455_v22 }
 0x2fc   :  { %3617 = vmatpush2.bf16.msra.mxu1 %v4417_v23  ;;  %3652 = vmatpush1.bf16.msra.mxu0 %v4453_v24 }
 0x2fd   :  { %3618 = vmatprep.subr.bf16.mxu1 %v4422_v25  ;;  %3653 = vmatprep.subr.bf16.mxu0 %v4458_v26 }
 0x300   :  { %3619 = vmatpush2.bf16.msra.mxu1 %v4420_v11  ;;  %3654 = vmatpush1.bf16.msra.mxu0 %v4456_v27  ;;  %v980_v11 = vsub.s32 7, %v4651_v15  ;;  %v976_v27 = vsub.s32 6, %v4651_v15 }
 0x301   :  { %3620 = vmatprep.subr.bf16.mxu1 %v4425_v28  ;;  %3655 = vmatprep.subr.bf16.mxu0 %v4461_v29 }
 0x302   :  { %v981_v28 = vrot.slane %v4700_v62, %v980_v11  ;;  %v977_v29 = vrot.slane %v4700_v62, %v976_v27 }
 0x304   :  { %3621 = vmatpush2.bf16.msra.mxu1 %v4423_v30  ;;  %3656 = vmatpush1.bf16.msra.mxu0 %v4459_v3 }
 0x305   :  { %3622 = vmatprep.subr.bf16.mxu1 %v4428_v31  ;;  %3657 = vmatprep.subr.bf16.mxu0 %v4464_v14 }
 0x308   :  { %3623 = vmatpush2.bf16.msra.mxu1 %v4426_v32  ;;  %3658 = vmatpush1.bf16.msra.mxu0 %v4462_v33 }
 0x309   :  { %3624 = vmatprep.subr.bf16.mxu1 %v4431_v4  ;;  %3659 = vmatprep.subr.bf16.mxu0 %v4467_v34 }
 0x30c   :  { %3625 = vmatpush2.bf16.msra.mxu1 %v4429_v35  ;;  %3660 = vmatpush2.bf16.msra.mxu0 %v4465_v36 }
 0x30d   :  { %3626 = vmatprep.subr.bf16.mxu1 %v4434_v37  ;;  %3661 = vmatprep.subr.bf16.mxu0 %v4470_v38 }
 0x310   :  { %3627 = vmatpush2.bf16.msra.mxu1 %v4432_v39  ;;  %3662 = vmatpush2.bf16.msra.mxu0 %v4468_v40 }
 0x311   :  { %3628 = vmatprep.subr.bf16.mxu1 %v4437_v43  ;;  %3663 = vmatprep.subr.bf16.mxu0 %v4473_v44 }
 0x314   :  { %3629 = vmatpush2.bf16.msra.mxu1 %v4435_v45  ;;  %3664 = vmatpush2.bf16.msra.mxu0 %v4471_v46 }
 0x315   :  { %3630 = vmatprep.subr.bf16.mxu1 %v4440_v47  ;;  %3665 = vmatprep.subr.bf16.mxu0 %v4476_v41 }
 0x318   :  { %3631 = vmatpush2.bf16.msra.mxu1 %v4438_v48  ;;  %3666 = vmatpush2.bf16.msra.mxu0 %v4474_v49 }
 0x319   :  { %3667 = vmatprep.subr.bf16.mxu0 %v4479_v42 }
 0x31b   :  { %v2476_v56 = vpop.f32.mrf.mxu1 }
 0x31c   :  { %v2519_v57 = vpop.f32.mrf.mxu0  ;;  %3668 = vmatpush2.bf16.msra.mxu0 %v4477_v52  ;;  %v2477_v0 = vadd.f32 %v2476_v56, %v969_v55  ;;  %v2831_v56 = vrot.slane %v2822_v51, %v4654_v16 }
 0x31d   :  { %v2478_v59 = vpop.f32.mrf.mxu1  ;;  %3669 = vmatprep.subr.bf16.mxu0 %v4482_v53 }
 0x31e   :  { %v2479_v61 = vadd.f32 %v2478_v59, %v973_v54  ;;  %v2521_v63 = vpop.f32.mrf.mxu0  ;;  %v2520_v19 = vadd.f32 %v2519_v57, %v2477_v0 }
 0x31f   :  { %v2480_v1 = vpop.f32.mrf.mxu1 }
 0x320   :  { %v2481_v2 = vadd.f32 %v2480_v1, %v969_v55  ;;  %v2523_v5 = vpop.f32.mrf.mxu0  ;;  %3670 = vmatpush2.bf16.msra.mxu0 %v4480_v58  ;;  %v2522_v9 = vadd.f32 %v2521_v63, %v2479_v61  ;;  %v2618_v24 = vmax.f32 %v2520_v19, 0.0  ;;  %v2827_v55 = vrot.slane %v2822_v51, %v4657_v17 }
 0x321   :  { %v2482_v7 = vpop.f32.mrf.mxu1  ;;  %3671 = vmatprep.subr.bf16.mxu0 %v4485_v60 }
 0x322   :  { %v2524_v12 = vadd.f32 %v2523_v5, %v2481_v2  ;;  %v2483_v10 = vadd.f32 %v2482_v7, %v973_v54  ;;  %v2525_v20 = vpop.f32.mrf.mxu0  ;;  %v2619_v22 = vmax.f32 %v2522_v9, 0.0 }
 0x324   :  { %v2526_v18 = vadd.f32 %v2525_v20, %v2483_v10  ;;  %3672 = vmatpush2.bf16.msra.mxu0 %v4483_v6  ;;  %v2626_v21 = vmax.f32 %v2524_v12, 0.0 }
 0x325   :  { %3673 = vmatprep.subr.bf16.mxu0 %v4488_v8 }
 0x326   :  { %v2627_v23 = vmax.f32 %v2526_v18, 0.0  ;;  %v4179_v26 = vpack.c.bf16 %v2626_v21, %v2618_v24 }
 0x328   :  { %v4180_v25 = vpack.c.bf16 %v2627_v23, %v2619_v22  ;;  %3674 = vmatpush2.bf16.msra.mxu0 %v4486_v13 }
 0x32a   :  { %3632 = vmatprep.mubr.bf16.mxu1 %v4180_v25 }
 0x32b   :  { %3633 = vmatmul.mubr.bf16.vlgmr.msra.gmra.mxu1 %v4179_v26 }
 0x35b   :  { %v2562_v30 = vpop.f32.mrf.mxu1 }
 0x35c   :  { %v2605_v3 = vpop.f32.mrf.mxu0  ;;  %v2563_v33 = vadd.f32 %v2562_v30, %v977_v29 }
 0x35d   :  { %v2564_v31 = vpop.f32.mrf.mxu1 }
 0x35e   :  { %v2565_v14 = vadd.f32 %v2564_v31, %v981_v28  ;;  %v2607_v32 = vpop.f32.mrf.mxu0  ;;  %v2606_v40 = vadd.f32 %v2605_v3, %v2563_v33 }
 0x35f   :  { %v2566_v4 = vpop.f32.mrf.mxu1 }
 0x360   :  { %v2567_v34 = vadd.f32 %v2566_v4, %v977_v29  ;;  %v2609_v35 = vpop.f32.mrf.mxu0  ;;  %v2608_v37 = vadd.f32 %v2607_v32, %v2565_v14  ;;  %v2620_v62 = vmax.f32 %v2606_v40, 0.0 }
 0x361   :  { %v2568_v36 = vpop.f32.mrf.mxu1 }
 0x362   :  { %v2610_v38 = vadd.f32 %v2609_v35, %v2567_v34  ;;  %v2569_v39 = vadd.f32 %v2568_v36, %v981_v28  ;;  %v2611_v43 = vpop.f32.mrf.mxu0  ;;  %v2621_v45 = vmax.f32 %v2608_v37, 0.0 }
 0x364   :  { %v2612_v15 = vadd.f32 %v2611_v43, %v2569_v39  ;;  %v2628_v44 = vmax.f32 %v2610_v38, 0.0 }
 0x366   :  { %v2629_v46 = vmax.f32 %v2612_v15, 0.0  ;;  %v4181_v41 = vpack.c.bf16 %v2628_v44, %v2620_v62 }
 0x368   :  { %v4182_v47 = vpack.c.bf16 %v2629_v46, %v2621_v45 }
 0x36a   :  { %3675 = vmatprep.mubr.bf16.mxu0 %v4182_v47 }
 0x36b   :  { %3676 = vmatmul.mubr.bf16.vlgmr.msra.gmra.mxu0 %v4181_v41 }
 0x39b   :  { %v3548_v48 = vpop.f32.mrf.mxu1 }
 0x39c   :  { %v3549_v59 = vadd.f32 %v3548_v48, %v2827_v55 }
 0x39d   :  { %v3550_v49 = vpop.f32.mrf.mxu1 }
 0x39e   :  { %v3551_v60 = vadd.f32 %v3550_v49, %v2831_v56 }
 0x39f   :  { %v3552_v42 = vpop.f32.mrf.mxu1 }
 0x3a0   :  { %v3553_v1 = vadd.f32 %v3552_v42, %v2827_v55 }
 0x3a1   :  { %v3554_v52 = vpop.f32.mrf.mxu1 }
 0x3a2   :  { %v3555_v7 = vadd.f32 %v3554_v52, %v2831_v56 }
 0x3ab   :  { %v3591_v50 = vpop.f32.mrf.mxu0 }
 0x3ac   :  { %v3592_v61 = vadd.f32 %v3591_v50, %v3549_v59 }
 0x3ad   :  { %v3593_v53 = vpop.f32.mrf.mxu0 }
 0x3ae   :  { %v3594_v2 = vadd.f32 %v3593_v53, %v3551_v60 }
 0x3af   :  { %v3595_v57 = vpop.f32.mrf.mxu0 }
 0x3b0   :  { %v3596_v8 = vadd.f32 %v3595_v57, %v3553_v1 }
 0x3b1   :  { %v3597_v63 = vpop.f32.mrf.mxu0 }
 0x3b2   :  { %v3598_v17 = vadd.f32 %v3597_v63, %v3555_v7 }
 0x3eb   :  { %v3634_v54 = vpop.f32.mrf.mxu1 }
 0x3ec   :  { %v3635_v5 = vadd.f32 %v3634_v54, %v3592_v61 }
 0x3ed   :  { %v3636_v58 = vpop.f32.mrf.mxu1 }
 0x3ee   :  { %v3637_v9 = vadd.f32 %v3636_v58, %v3594_v2 }
 0x3ef   :  { %v3638_v0 = vpop.f32.mrf.mxu1 }
 0x3f0   :  { %v3639_v20 = vadd.f32 %v3638_v0, %v3596_v8 }
 0x3f1   :  { %v3640_v10 = vpop.f32.mrf.mxu1 }
 0x3f2   :  { %v3641_v13 = vadd.f32 %v3640_v10, %v3598_v17 }
 0x42b   :  { %v3677_v6 = vpop.f32.mrf.mxu0 }
 0x42c   :  { %v3678_v12 = vadd.f32 %v3677_v6, %v3635_v5 }
 0x42d   :  { %v3679_v19 = vpop.f32.mrf.mxu0 }
 0x42e   :  { %3686 = vst [vmem:[%s4760_s9] sm:$0xff] %v3678_v12  ;;  %v3680_v16 = vadd.f32 %v3679_v19, %v3637_v9 }
 0x42f   :  { %v3681_v18 = vpop.f32.mrf.mxu0 }
 0x430   :  { %3687 = vst [vmem:[%s4760_s9 + $0x8] sm:$0xff] %v3680_v16  ;;  %v3682_v21 = vadd.f32 %v3681_v18, %v3639_v20 }
 0x431   :  { %v3683_v22 = vpop.f32.mrf.mxu0 }
 0x432   :  { %3688 = vst [vmem:[%s4760_s9 + $0x10] sm:$0xff] %v3682_v21  ;;  %v3684_v23 = vadd.f32 %v3683_v22, %v3641_v13 }
 0x434   :  { %3689 = vst [vmem:[%s4760_s9 + $0x18] sm:$0xff] %v3684_v23 }
 0x435   :  { %3694 = vsyncpa [#allocation4], 1 }
 0x436   :  { %3695 = vsyncpa [#allocation6], 1 }
 0x437   :  { %3696 = vsyncpa [#allocation9], 1 }

</bundles_post_ra>
